<compile_context>
chip_gen: v6e
topology: v6e:2x2x1
jax: 0.10.0
libtpu: 0.0.40
codegen_flags: <defaults>
</compile_context>

<pallas_src>
import functools
import math

import jax
import jax.numpy as jnp
from jax.experimental import pallas as pl
from jax.experimental.pallas import tpu as pltpu


def word_lstm_kernel(T, Bp,
                     x_ref,
                     wih_f_ref, whh_f_ref, b_f_ref,
                     wih_b_ref, whh_b_ref, b_b_ref,
                     wp_f_ref, wp_b_ref,
                     out_ref,
                     gxf_scr, gxb_scr, hf_scr, hb_scr):
    E = x_ref.shape[-1]
    H = E  # hidden_size == word_embed_size

    x = x_ref[...]                                   # (T*Bp, E)

    # ---- Precompute x->gate contributions for every timestep (two big MXU matmuls,
    #      bias folded in; removed from the serial dependency chain). ----
    gxf_scr[...] = (jnp.dot(x, wih_f_ref[...], preferred_element_type=jnp.float32)
                    + b_f_ref[...])
    gxb_scr[...] = (jnp.dot(x, wih_b_ref[...], preferred_element_type=jnp.float32)
                    + b_b_ref[...])

    whh_f = whh_f_ref[...]                           # (H, 4H)
    whh_b = whh_b_ref[...]                           # (H, 4H)

    def activate(gates, c):
        # PyTorch LSTM gate order: i, f, g, o
        i = jax.nn.sigmoid(gates[:, 0 * H:1 * H])
        f = jax.nn.sigmoid(gates[:, 1 * H:2 * H])
        g = jnp.tanh(gates[:, 2 * H:3 * H])
        o = jax.nn.sigmoid(gates[:, 3 * H:4 * H])
        c_new = f * c + i * g
        h_new = o * jnp.tanh(c_new)
        return h_new, c_new

    h0 = jnp.zeros((Bp, H), jnp.float32)
    c0 = jnp.zeros((Bp, H), jnp.float32)

    # ---- Interleaved fwd/bwd recurrence: two independent dependency chains per
    #      iteration, fully unrolled (small fixed T) for cross-step scheduling. ----
    def body(i, carry):
        hf, cf, hb, cb = carry
        rf = pl.multiple_of(i * Bp, Bp)              # forward timestep row offset
        rb = pl.multiple_of((T - 1 - i) * Bp, Bp)    # backward timestep row offset

        gf = (jnp.dot(hf, whh_f, preferred_element_type=jnp.float32)
              + gxf_scr[pl.ds(rf, Bp), :])
        hf, cf = activate(gf, cf)
        hf_scr[pl.ds(rf, Bp), :] = hf

        gb = (jnp.dot(hb, whh_b, preferred_element_type=jnp.float32)
              + gxb_scr[pl.ds(rb, Bp), :])
        hb, cb = activate(gb, cb)
        hb_scr[pl.ds(rb, Bp), :] = hb
        return hf, cf, hb, cb

    jax.lax.fori_loop(0, T, body, (h0, c0, h0, c0), unroll=True)

    # ---- Single batched output projection (no per-step RMW on out_ref). ----
    out_ref[...] = (jnp.dot(hf_scr[...], wp_f_ref[...], preferred_element_type=jnp.float32)
                    + jnp.dot(hb_scr[...], wp_b_ref[...], preferred_element_type=jnp.float32))


def word_lstm_forward(x, kparams):
    T, B, E = x.shape
    Bp = ((B + 7) // 8) * 8                          # pad batch to full sublanes
    if Bp != B:
        x = jnp.pad(x, ((0, 0), (0, Bp - B), (0, 0)))
    x_flat = x.reshape(T * Bp, E)                    # kernel works on 2-D slabs only

    vmem = pl.BlockSpec(memory_space=pltpu.MemorySpace.VMEM)
    kernel = functools.partial(word_lstm_kernel, T, Bp)

    out_flat = pl.pallas_call(
        kernel,
        out_shape=jax.ShapeDtypeStruct((T * Bp, E), jnp.float32),
        in_specs=[vmem] * 9,
        out_specs=vmem,
        scratch_shapes=[
            pltpu.VMEM((T * Bp, 4 * E), jnp.float32),   # gates_x forward
            pltpu.VMEM((T * Bp, 4 * E), jnp.float32),   # gates_x backward
            pltpu.VMEM((T * Bp, E), jnp.float32),       # h forward
            pltpu.VMEM((T * Bp, E), jnp.float32),       # h backward
        ],
    )(x_flat,
      kparams["wih_f"], kparams["whh_f"], kparams["b_f"],
      kparams["wih_b"], kparams["whh_b"], kparams["b_b"],
      kparams["wp_f"], kparams["wp_b"])

    out = out_flat.reshape(T, Bp, E)
    return out[:, :B, :]                             # drop padded batch rows


# ---------------- pure-JAX reference (mirrors PyTorch nn.LSTM + nn.Linear) ----------------
def ref_forward(x, raw):
    T, B, E = x.shape
    H = E

    def make_cell(wih, whh, b):
        def cell(carry, x_t):
            h, c = carry
            gates = x_t @ wih.T + h @ whh.T + b
            i, f, g, o = jnp.split(gates, 4, axis=-1)
            i = jax.nn.sigmoid(i)
            f = jax.nn.sigmoid(f)
            g = jnp.tanh(g)
            o = jax.nn.sigmoid(o)
            c = f * c + i * g
            h = o * jnp.tanh(c)
            return (h, c), h
        return cell

    h0 = jnp.zeros((B, H), jnp.float32)
    c0 = jnp.zeros((B, H), jnp.float32)

    _, hf = jax.lax.scan(
        make_cell(raw["w_ih_f"], raw["w_hh_f"], raw["b_ih_f"] + raw["b_hh_f"]),
        (h0, c0), x)
    _, hb = jax.lax.scan(
        make_cell(raw["w_ih_b"], raw["w_hh_b"], raw["b_ih_b"] + raw["b_hh_b"]),
        (h0, c0), x[::-1])
    hb = hb[::-1]

    enc_hiddens = jnp.concatenate([hf, hb], axis=-1)        # (T, B, 2H)
    return enc_hiddens @ raw["w_proj"].T                     # (T, B, E)


if __name__ == "__main__":
    T, B, E = 8, 4, 32
    H = E

    key = jax.random.PRNGKey(0)
    kx, *wkeys = jax.random.split(key, 12)
    bound = 1.0 / math.sqrt(H)

    def u(k, shape):
        return jax.random.uniform(k, shape, jnp.float32, -bound, bound)

    # Raw PyTorch-convention parameters.
    raw = {
        "w_ih_f": u(wkeys[0], (4 * H, E)),
        "w_hh_f": u(wkeys[1], (4 * H, H)),
        "b_ih_f": u(wkeys[2], (4 * H,)),
        "b_hh_f": u(wkeys[3], (4 * H,)),
        "w_ih_b": u(wkeys[4], (4 * H, E)),
        "w_hh_b": u(wkeys[5], (4 * H, H)),
        "b_ih_b": u(wkeys[6], (4 * H,)),
        "b_hh_b": u(wkeys[7], (4 * H,)),
        "w_proj": u(wkeys[8], (E, 2 * H)),   # nn.Linear(2E, E, bias=False)
    }

    # Kernel-friendly (pre-transposed, 2-D biases, projection split per direction).
    kparams = {
        "wih_f": raw["w_ih_f"].T,                                # (E, 4H)
        "whh_f": raw["w_hh_f"].T,                                # (H, 4H)
        "b_f": (raw["b_ih_f"] + raw["b_hh_f"]).reshape(1, 4 * H),
        "wih_b": raw["w_ih_b"].T,
        "whh_b": raw["w_hh_b"].T,
        "b_b": (raw["b_ih_b"] + raw["b_hh_b"]).reshape(1, 4 * H),
        "wp_f": raw["w_proj"][:, :H].T,                          # (H, E)
        "wp_b": raw["w_proj"][:, H:].T,                          # (H, E)
    }

    word_embedding = jax.random.normal(kx, (T, B, E), jnp.float32)

    out = word_lstm_forward(word_embedding, kparams)
    out = jax.block_until_ready(out)

    ref = ref_forward(word_embedding, raw)
    assert out.shape == (T, B, E)
    assert jnp.allclose(out, ref, atol=1e-5, rtol=1e-5), (
        f"max abs diff {jnp.max(jnp.abs(out - ref))}")

    print("KERNEL_OK")
</pallas_src>

<mosaic_0001>
module attributes {stable_mosaic.version = 11 : i64} {
  func.func @word_lstm_kernel(%arg0: memref<64x32xf32, #tpu.memory_space<vmem>>, %arg1: memref<32x128xf32, #tpu.memory_space<vmem>>, %arg2: memref<32x128xf32, #tpu.memory_space<vmem>>, %arg3: memref<1x128xf32, #tpu.memory_space<vmem>>, %arg4: memref<32x128xf32, #tpu.memory_space<vmem>>, %arg5: memref<32x128xf32, #tpu.memory_space<vmem>>, %arg6: memref<1x128xf32, #tpu.memory_space<vmem>>, %arg7: memref<32x32xf32, #tpu.memory_space<vmem>>, %arg8: memref<32x32xf32, #tpu.memory_space<vmem>>, %arg9: memref<64x32xf32, #tpu.memory_space<vmem>>, %arg10: memref<64x128xf32, #tpu.memory_space<vmem>>, %arg11: memref<64x128xf32, #tpu.memory_space<vmem>>, %arg12: memref<64x32xf32, #tpu.memory_space<vmem>>, %arg13: memref<64x32xf32, #tpu.memory_space<vmem>>) attributes {dimension_semantics = [], scalar_prefetch = 0 : i64, scratch_operands = 4 : i64, tpu.core_type = #tpu.core_type<tc>} {
    %c0 = arith.constant 0 : index
    %c0_0 = arith.constant 0 : index
    %0 = vector.load %arg0[%c0, %c0_0] : memref<64x32xf32, #tpu.memory_space<vmem>>, vector<64x32xf32>
    %c0_1 = arith.constant 0 : index
    %c0_2 = arith.constant 0 : index
    %1 = vector.load %arg1[%c0_1, %c0_2] : memref<32x128xf32, #tpu.memory_space<vmem>>, vector<32x128xf32>
    %cst = arith.constant dense<0.000000e+00> : vector<64x128xf32>
    %2 = tpu.matmul %0, %1, %cst {dimension_numbers = #tpu.dot_dimension_numbers<[1], [0], [0], [1], [0, 0, 1, 1], [], []>} : vector<64x32xf32>, vector<32x128xf32>, vector<64x128xf32> -> vector<64x128xf32>
    %c0_3 = arith.constant 0 : index
    %c0_4 = arith.constant 0 : index
    %3 = vector.load %arg3[%c0_3, %c0_4] : memref<1x128xf32, #tpu.memory_space<vmem>>, vector<1x128xf32>
    %4 = vector.broadcast %3 : vector<1x128xf32> to vector<64x128xf32>
    %5 = arith.addf %2, %4 : vector<64x128xf32>
    %c0_5 = arith.constant 0 : index
    %c0_6 = arith.constant 0 : index
    %6 = vector.load %arg10[%c0_5, %c0_6] : memref<64x128xf32, #tpu.memory_space<vmem>>, vector<64x128xf32>
    tpu.vector_store %arg10[%c0_5, %c0_6], %5 {strides = array<i32>} : memref<64x128xf32, #tpu.memory_space<vmem>>, vector<64x128xf32>,
    %c0_7 = arith.constant 0 : index
    %c0_8 = arith.constant 0 : index
    %7 = vector.load %arg4[%c0_7, %c0_8] : memref<32x128xf32, #tpu.memory_space<vmem>>, vector<32x128xf32>
    %cst_9 = arith.constant dense<0.000000e+00> : vector<64x128xf32>
    %8 = tpu.matmul %0, %7, %cst_9 {dimension_numbers = #tpu.dot_dimension_numbers<[1], [0], [0], [1], [0, 0, 1, 1], [], []>} : vector<64x32xf32>, vector<32x128xf32>, vector<64x128xf32> -> vector<64x128xf32>
    %c0_10 = arith.constant 0 : index
    %c0_11 = arith.constant 0 : index
    %9 = vector.load %arg6[%c0_10, %c0_11] : memref<1x128xf32, #tpu.memory_space<vmem>>, vector<1x128xf32>
    %10 = vector.broadcast %9 : vector<1x128xf32> to vector<64x128xf32>
    %11 = arith.addf %8, %10 : vector<64x128xf32>
    %c0_12 = arith.constant 0 : index
    %c0_13 = arith.constant 0 : index
    %12 = vector.load %arg11[%c0_12, %c0_13] : memref<64x128xf32, #tpu.memory_space<vmem>>, vector<64x128xf32>
    tpu.vector_store %arg11[%c0_12, %c0_13], %11 {strides = array<i32>} : memref<64x128xf32, #tpu.memory_space<vmem>>, vector<64x128xf32>,
    %c0_14 = arith.constant 0 : index
    %c0_15 = arith.constant 0 : index
    %13 = vector.load %arg2[%c0_14, %c0_15] : memref<32x128xf32, #tpu.memory_space<vmem>>, vector<32x128xf32>
    %c0_16 = arith.constant 0 : index
    %c0_17 = arith.constant 0 : index
    %14 = vector.load %arg5[%c0_16, %c0_17] : memref<32x128xf32, #tpu.memory_space<vmem>>, vector<32x128xf32>
    %cst_18 = arith.constant 0.000000e+00 : f32
    %15 = vector.broadcast %cst_18 : f32 to vector<8x32xf32>
    %cst_19 = arith.constant 0.000000e+00 : f32
    %16 = vector.broadcast %cst_19 : f32 to vector<8x32xf32>
    %c0_i32 = arith.constant 0 : i32
    %c8_i32 = arith.constant 8 : i32
    %17 = arith.muli %c0_i32, %c8_i32 : i32
    %18 = tpu.assume_multiple %17, 8 : i32
    %c7_i32 = arith.constant 7 : i32
    %19 = arith.subi %c7_i32, %c0_i32 : i32
    %c8_i32_20 = arith.constant 8 : i32
    %20 = arith.muli %19, %c8_i32_20 : i32
    %21 = tpu.assume_multiple %20, 8 : i32
    %cst_21 = arith.constant dense<0.000000e+00> : vector<8x128xf32>
    %22 = tpu.matmul %15, %13, %cst_21 {dimension_numbers = #tpu.dot_dimension_numbers<[1], [0], [0], [1], [0, 0, 1, 1], [], []>} : vector<8x32xf32>, vector<32x128xf32>, vector<8x128xf32> -> vector<8x128xf32>
    %23 = arith.index_cast %18 : i32 to index
    %c0_22 = arith.constant 0 : index
    %24 = vector.load %arg10[%23, %c0_22] : memref<64x128xf32, #tpu.memory_space<vmem>>, vector<8x128xf32>
    %25 = arith.addf %22, %24 : vector<8x128xf32>
    %26 = vector.extract_strided_slice %25 {offsets = [0, 0], sizes = [8, 32], strides = [1, 1]} : vector<8x128xf32> to vector<8x32xf32>
    %27 = arith.negf %26 : vector<8x32xf32>
    %28 = math.exp %27 : vector<8x32xf32>
    %cst_23 = arith.constant 1.000000e+00 : f32
    %29 = vector.broadcast %cst_23 : f32 to vector<8x32xf32>
    %30 = arith.addf %29, %28 : vector<8x32xf32>
    %31 = arith.divf %29, %30 : vector<8x32xf32>
    %32 = vector.extract_strided_slice %25 {offsets = [0, 32], sizes = [8, 32], strides = [1, 1]} : vector<8x128xf32> to vector<8x32xf32>
    %33 = arith.negf %32 : vector<8x32xf32>
    %34 = math.exp %33 : vector<8x32xf32>
    %cst_24 = arith.constant 1.000000e+00 : f32
    %35 = vector.broadcast %cst_24 : f32 to vector<8x32xf32>
    %36 = arith.addf %35, %34 : vector<8x32xf32>
    %37 = arith.divf %35, %36 : vector<8x32xf32>
    %38 = vector.extract_strided_slice %25 {offsets = [0, 64], sizes = [8, 32], strides = [1, 1]} : vector<8x128xf32> to vector<8x32xf32>
    %39 = math.tanh %38 : vector<8x32xf32>
    %40 = vector.extract_strided_slice %25 {offsets = [0, 96], sizes = [8, 32], strides = [1, 1]} : vector<8x128xf32> to vector<8x32xf32>
    %41 = arith.negf %40 : vector<8x32xf32>
    %42 = math.exp %41 : vector<8x32xf32>
    %cst_25 = arith.constant 1.000000e+00 : f32
    %43 = vector.broadcast %cst_25 : f32 to vector<8x32xf32>
    %44 = arith.addf %43, %42 : vector<8x32xf32>
    %45 = arith.divf %43, %44 : vector<8x32xf32>
    %46 = arith.mulf %37, %16 : vector<8x32xf32>
    %47 = arith.mulf %31, %39 : vector<8x32xf32>
    %48 = arith.addf %46, %47 : vector<8x32xf32>
    %49 = math.tanh %48 : vector<8x32xf32>
    %50 = arith.mulf %45, %49 : vector<8x32xf32>
    %51 = arith.index_cast %18 : i32 to index
    %c0_26 = arith.constant 0 : index
    %52 = vector.load %arg12[%51, %c0_26] : memref<64x32xf32, #tpu.memory_space<vmem>>, vector<8x32xf32>
    tpu.vector_store %arg12[%51, %c0_26], %50 {strides = array<i32>} : memref<64x32xf32, #tpu.memory_space<vmem>>, vector<8x32xf32>,
    %cst_27 = arith.constant dense<0.000000e+00> : vector<8x128xf32>
    %53 = tpu.matmul %15, %14, %cst_27 {dimension_numbers = #tpu.dot_dimension_numbers<[1], [0], [0], [1], [0, 0, 1, 1], [], []>} : vector<8x32xf32>, vector<32x128xf32>, vector<8x128xf32> -> vector<8x128xf32>
    %54 = arith.index_cast %21 : i32 to index
    %c0_28 = arith.constant 0 : index
    %55 = vector.load %arg11[%54, %c0_28] : memref<64x128xf32, #tpu.memory_space<vmem>>, vector<8x128xf32>
    %56 = arith.addf %53, %55 : vector<8x128xf32>
    %57 = vector.extract_strided_slice %56 {offsets = [0, 0], sizes = [8, 32], strides = [1, 1]} : vector<8x128xf32> to vector<8x32xf32>
    %58 = arith.negf %57 : vector<8x32xf32>
    %59 = math.exp %58 : vector<8x32xf32>
    %cst_29 = arith.constant 1.000000e+00 : f32
    %60 = vector.broadcast %cst_29 : f32 to vector<8x32xf32>
    %61 = arith.addf %60, %59 : vector<8x32xf32>
    %62 = arith.divf %60, %61 : vector<8x32xf32>
    %63 = vector.extract_strided_slice %56 {offsets = [0, 32], sizes = [8, 32], strides = [1, 1]} : vector<8x128xf32> to vector<8x32xf32>
    %64 = arith.negf %63 : vector<8x32xf32>
    %65 = math.exp %64 : vector<8x32xf32>
    %cst_30 = arith.constant 1.000000e+00 : f32
    %66 = vector.broadcast %cst_30 : f32 to vector<8x32xf32>
    %67 = arith.addf %66, %65 : vector<8x32xf32>
    %68 = arith.divf %66, %67 : vector<8x32xf32>
    %69 = vector.extract_strided_slice %56 {offsets = [0, 64], sizes = [8, 32], strides = [1, 1]} : vector<8x128xf32> to vector<8x32xf32>
    %70 = math.tanh %69 : vector<8x32xf32>
    %71 = vector.extract_strided_slice %56 {offsets = [0, 96], sizes = [8, 32], strides = [1, 1]} : vector<8x128xf32> to vector<8x32xf32>
    %72 = arith.negf %71 : vector<8x32xf32>
    %73 = math.exp %72 : vector<8x32xf32>
    %cst_31 = arith.constant 1.000000e+00 : f32
    %74 = vector.broadcast %cst_31 : f32 to vector<8x32xf32>
    %75 = arith.addf %74, %73 : vector<8x32xf32>
    %76 = arith.divf %74, %75 : vector<8x32xf32>
    %77 = arith.mulf %68, %16 : vector<8x32xf32>
    %78 = arith.mulf %62, %70 : vector<8x32xf32>
    %79 = arith.addf %77, %78 : vector<8x32xf32>
    %80 = math.tanh %79 : vector<8x32xf32>
    %81 = arith.mulf %76, %80 : vector<8x32xf32>
    %82 = arith.index_cast %21 : i32 to index
    %c0_32 = arith.constant 0 : index
    %83 = vector.load %arg13[%82, %c0_32] : memref<64x32xf32, #tpu.memory_space<vmem>>, vector<8x32xf32>
    tpu.vector_store %arg13[%82, %c0_32], %81 {strides = array<i32>} : memref<64x32xf32, #tpu.memory_space<vmem>>, vector<8x32xf32>,
    %c1_i32 = arith.constant 1 : i32
    %c8_i32_33 = arith.constant 8 : i32
    %84 = arith.muli %c1_i32, %c8_i32_33 : i32
    %85 = tpu.assume_multiple %84, 8 : i32
    %c7_i32_34 = arith.constant 7 : i32
    %86 = arith.subi %c7_i32_34, %c1_i32 : i32
    %c8_i32_35 = arith.constant 8 : i32
    %87 = arith.muli %86, %c8_i32_35 : i32
    %88 = tpu.assume_multiple %87, 8 : i32
    %cst_36 = arith.constant dense<0.000000e+00> : vector<8x128xf32>
    %89 = tpu.matmul %50, %13, %cst_36 {dimension_numbers = #tpu.dot_dimension_numbers<[1], [0], [0], [1], [0, 0, 1, 1], [], []>} : vector<8x32xf32>, vector<32x128xf32>, vector<8x128xf32> -> vector<8x128xf32>
    %90 = arith.index_cast %85 : i32 to index
    %c0_37 = arith.constant 0 : index
    %91 = vector.load %arg10[%90, %c0_37] : memref<64x128xf32, #tpu.memory_space<vmem>>, vector<8x128xf32>
    %92 = arith.addf %89, %91 : vector<8x128xf32>
    %93 = vector.extract_strided_slice %92 {offsets = [0, 0], sizes = [8, 32], strides = [1, 1]} : vector<8x128xf32> to vector<8x32xf32>
    %94 = arith.negf %93 : vector<8x32xf32>
    %95 = math.exp %94 : vector<8x32xf32>
    %cst_38 = arith.constant 1.000000e+00 : f32
    %96 = vector.broadcast %cst_38 : f32 to vector<8x32xf32>
    %97 = arith.addf %96, %95 : vector<8x32xf32>
    %98 = arith.divf %96, %97 : vector<8x32xf32>
    %99 = vector.extract_strided_slice %92 {offsets = [0, 32], sizes = [8, 32], strides = [1, 1]} : vector<8x128xf32> to vector<8x32xf32>
    %100 = arith.negf %99 : vector<8x32xf32>
    %101 = math.exp %100 : vector<8x32xf32>
    %cst_39 = arith.constant 1.000000e+00 : f32
    %102 = vector.broadcast %cst_39 : f32 to vector<8x32xf32>
    %103 = arith.addf %102, %101 : vector<8x32xf32>
    %104 = arith.divf %102, %103 : vector<8x32xf32>
    %105 = vector.extract_strided_slice %92 {offsets = [0, 64], sizes = [8, 32], strides = [1, 1]} : vector<8x128xf32> to vector<8x32xf32>
    %106 = math.tanh %105 : vector<8x32xf32>
    %107 = vector.extract_strided_slice %92 {offsets = [0, 96], sizes = [8, 32], strides = [1, 1]} : vector<8x128xf32> to vector<8x32xf32>
    %108 = arith.negf %107 : vector<8x32xf32>
    %109 = math.exp %108 : vector<8x32xf32>
    %cst_40 = arith.constant 1.000000e+00 : f32
    %110 = vector.broadcast %cst_40 : f32 to vector<8x32xf32>
    %111 = arith.addf %110, %109 : vector<8x32xf32>
    %112 = arith.divf %110, %111 : vector<8x32xf32>
    %113 = arith.mulf %104, %48 : vector<8x32xf32>
    %114 = arith.mulf %98, %106 : vector<8x32xf32>
    %115 = arith.addf %113, %114 : vector<8x32xf32>
    %116 = math.tanh %115 : vector<8x32xf32>
    %117 = arith.mulf %112, %116 : vector<8x32xf32>
    %118 = arith.index_cast %85 : i32 to index
    %c0_41 = arith.constant 0 : index
    %119 = vector.load %arg12[%118, %c0_41] : memref<64x32xf32, #tpu.memory_space<vmem>>, vector<8x32xf32>
    tpu.vector_store %arg12[%118, %c0_41], %117 {strides = array<i32>} : memref<64x32xf32, #tpu.memory_space<vmem>>, vector<8x32xf32>,
    %cst_42 = arith.constant dense<0.000000e+00> : vector<8x128xf32>
    %120 = tpu.matmul %81, %14, %cst_42 {dimension_numbers = #tpu.dot_dimension_numbers<[1], [0], [0], [1], [0, 0, 1, 1], [], []>} : vector<8x32xf32>, vector<32x128xf32>, vector<8x128xf32> -> vector<8x128xf32>
    %121 = arith.index_cast %88 : i32 to index
    %c0_43 = arith.constant 0 : index
    %122 = vector.load %arg11[%121, %c0_43] : memref<64x128xf32, #tpu.memory_space<vmem>>, vector<8x128xf32>
    %123 = arith.addf %120, %122 : vector<8x128xf32>
    %124 = vector.extract_strided_slice %123 {offsets = [0, 0], sizes = [8, 32], strides = [1, 1]} : vector<8x128xf32> to vector<8x32xf32>
    %125 = arith.negf %124 : vector<8x32xf32>
    %126 = math.exp %125 : vector<8x32xf32>
    %cst_44 = arith.constant 1.000000e+00 : f32
    %127 = vector.broadcast %cst_44 : f32 to vector<8x32xf32>
    %128 = arith.addf %127, %126 : vector<8x32xf32>
    %129 = arith.divf %127, %128 : vector<8x32xf32>
    %130 = vector.extract_strided_slice %123 {offsets = [0, 32], sizes = [8, 32], strides = [1, 1]} : vector<8x128xf32> to vector<8x32xf32>
    %131 = arith.negf %130 : vector<8x32xf32>
    %132 = math.exp %131 : vector<8x32xf32>
    %cst_45 = arith.constant 1.000000e+00 : f32
    %133 = vector.broadcast %cst_45 : f32 to vector<8x32xf32>
    %134 = arith.addf %133, %132 : vector<8x32xf32>
    %135 = arith.divf %133, %134 : vector<8x32xf32>
    %136 = vector.extract_strided_slice %123 {offsets = [0, 64], sizes = [8, 32], strides = [1, 1]} : vector<8x128xf32> to vector<8x32xf32>
    %137 = math.tanh %136 : vector<8x32xf32>
    %138 = vector.extract_strided_slice %123 {offsets = [0, 96], sizes = [8, 32], strides = [1, 1]} : vector<8x128xf32> to vector<8x32xf32>
    %139 = arith.negf %138 : vector<8x32xf32>
    %140 = math.exp %139 : vector<8x32xf32>
    %cst_46 = arith.constant 1.000000e+00 : f32
    %141 = vector.broadcast %cst_46 : f32 to vector<8x32xf32>
    %142 = arith.addf %141, %140 : vector<8x32xf32>
    %143 = arith.divf %141, %142 : vector<8x32xf32>
    %144 = arith.mulf %135, %79 : vector<8x32xf32>
    %145 = arith.mulf %129, %137 : vector<8x32xf32>
    %146 = arith.addf %144, %145 : vector<8x32xf32>
    %147 = math.tanh %146 : vector<8x32xf32>
    %148 = arith.mulf %143, %147 : vector<8x32xf32>
    %149 = arith.index_cast %88 : i32 to index
    %c0_47 = arith.constant 0 : index
    %150 = vector.load %arg13[%149, %c0_47] : memref<64x32xf32, #tpu.memory_space<vmem>>, vector<8x32xf32>
    tpu.vector_store %arg13[%149, %c0_47], %148 {strides = array<i32>} : memref<64x32xf32, #tpu.memory_space<vmem>>, vector<8x32xf32>,
    %c2_i32 = arith.constant 2 : i32
    %c8_i32_48 = arith.constant 8 : i32
    %151 = arith.muli %c2_i32, %c8_i32_48 : i32
    %152 = tpu.assume_multiple %151, 8 : i32
    %c7_i32_49 = arith.constant 7 : i32
    %153 = arith.subi %c7_i32_49, %c2_i32 : i32
    %c8_i32_50 = arith.constant 8 : i32
    %154 = arith.muli %153, %c8_i32_50 : i32
    %155 = tpu.assume_multiple %154, 8 : i32
    %cst_51 = arith.constant dense<0.000000e+00> : vector<8x128xf32>
    %156 = tpu.matmul %117, %13, %cst_51 {dimension_numbers = #tpu.dot_dimension_numbers<[1], [0], [0], [1], [0, 0, 1, 1], [], []>} : vector<8x32xf32>, vector<32x128xf32>, vector<8x128xf32> -> vector<8x128xf32>
    %157 = arith.index_cast %152 : i32 to index
    %c0_52 = arith.constant 0 : index
    %158 = vector.load %arg10[%157, %c0_52] : memref<64x128xf32, #tpu.memory_space<vmem>>, vector<8x128xf32>
    %159 = arith.addf %156, %158 : vector<8x128xf32>
    %160 = vector.extract_strided_slice %159 {offsets = [0, 0], sizes = [8, 32], strides = [1, 1]} : vector<8x128xf32> to vector<8x32xf32>
    %161 = arith.negf %160 : vector<8x32xf32>
    %162 = math.exp %161 : vector<8x32xf32>
    %cst_53 = arith.constant 1.000000e+00 : f32
    %163 = vector.broadcast %cst_53 : f32 to vector<8x32xf32>
    %164 = arith.addf %163, %162 : vector<8x32xf32>
    %165 = arith.divf %163, %164 : vector<8x32xf32>
    %166 = vector.extract_strided_slice %159 {offsets = [0, 32], sizes = [8, 32], strides = [1, 1]} : vector<8x128xf32> to vector<8x32xf32>
    %167 = arith.negf %166 : vector<8x32xf32>
    %168 = math.exp %167 : vector<8x32xf32>
    %cst_54 = arith.constant 1.000000e+00 : f32
    %169 = vector.broadcast %cst_54 : f32 to vector<8x32xf32>
    %170 = arith.addf %169, %168 : vector<8x32xf32>
    %171 = arith.divf %169, %170 : vector<8x32xf32>
    %172 = vector.extract_strided_slice %159 {offsets = [0, 64], sizes = [8, 32], strides = [1, 1]} : vector<8x128xf32> to vector<8x32xf32>
    %173 = math.tanh %172 : vector<8x32xf32>
    %174 = vector.extract_strided_slice %159 {offsets = [0, 96], sizes = [8, 32], strides = [1, 1]} : vector<8x128xf32> to vector<8x32xf32>
    %175 = arith.negf %174 : vector<8x32xf32>
    %176 = math.exp %175 : vector<8x32xf32>
    %cst_55 = arith.constant 1.000000e+00 : f32
    %177 = vector.broadcast %cst_55 : f32 to vector<8x32xf32>
    %178 = arith.addf %177, %176 : vector<8x32xf32>
    %179 = arith.divf %177, %178 : vector<8x32xf32>
    %180 = arith.mulf %171, %115 : vector<8x32xf32>
    %181 = arith.mulf %165, %173 : vector<8x32xf32>
    %182 = arith.addf %180, %181 : vector<8x32xf32>
    %183 = math.tanh %182 : vector<8x32xf32>
    %184 = arith.mulf %179, %183 : vector<8x32xf32>
    %185 = arith.index_cast %152 : i32 to index
    %c0_56 = arith.constant 0 : index
    %186 = vector.load %arg12[%185, %c0_56] : memref<64x32xf32, #tpu.memory_space<vmem>>, vector<8x32xf32>
    tpu.vector_store %arg12[%185, %c0_56], %184 {strides = array<i32>} : memref<64x32xf32, #tpu.memory_space<vmem>>, vector<8x32xf32>,
    %cst_57 = arith.constant dense<0.000000e+00> : vector<8x128xf32>
    %187 = tpu.matmul %148, %14, %cst_57 {dimension_numbers = #tpu.dot_dimension_numbers<[1], [0], [0], [1], [0, 0, 1, 1], [], []>} : vector<8x32xf32>, vector<32x128xf32>, vector<8x128xf32> -> vector<8x128xf32>
    %188 = arith.index_cast %155 : i32 to index
    %c0_58 = arith.constant 0 : index
    %189 = vector.load %arg11[%188, %c0_58] : memref<64x128xf32, #tpu.memory_space<vmem>>, vector<8x128xf32>
    %190 = arith.addf %187, %189 : vector<8x128xf32>
    %191 = vector.extract_strided_slice %190 {offsets = [0, 0], sizes = [8, 32], strides = [1, 1]} : vector<8x128xf32> to vector<8x32xf32>
    %192 = arith.negf %191 : vector<8x32xf32>
    %193 = math.exp %192 : vector<8x32xf32>
    %cst_59 = arith.constant 1.000000e+00 : f32
    %194 = vector.broadcast %cst_59 : f32 to vector<8x32xf32>
    %195 = arith.addf %194, %193 : vector<8x32xf32>
    %196 = arith.divf %194, %195 : vector<8x32xf32>
    %197 = vector.extract_strided_slice %190 {offsets = [0, 32], sizes = [8, 32], strides = [1, 1]} : vector<8x128xf32> to vector<8x32xf32>
    %198 = arith.negf %197 : vector<8x32xf32>
    %199 = math.exp %198 : vector<8x32xf32>
    %cst_60 = arith.constant 1.000000e+00 : f32
    %200 = vector.broadcast %cst_60 : f32 to vector<8x32xf32>
    %201 = arith.addf %200, %199 : vector<8x32xf32>
    %202 = arith.divf %200, %201 : vector<8x32xf32>
    %203 = vector.extract_strided_slice %190 {offsets = [0, 64], sizes = [8, 32], strides = [1, 1]} : vector<8x128xf32> to vector<8x32xf32>
    %204 = math.tanh %203 : vector<8x32xf32>
    %205 = vector.extract_strided_slice %190 {offsets = [0, 96], sizes = [8, 32], strides = [1, 1]} : vector<8x128xf32> to vector<8x32xf32>
    %206 = arith.negf %205 : vector<8x32xf32>
    %207 = math.exp %206 : vector<8x32xf32>
    %cst_61 = arith.constant 1.000000e+00 : f32
    %208 = vector.broadcast %cst_61 : f32 to vector<8x32xf32>
    %209 = arith.addf %208, %207 : vector<8x32xf32>
    %210 = arith.divf %208, %209 : vector<8x32xf32>
    %211 = arith.mulf %202, %146 : vector<8x32xf32>
    %212 = arith.mulf %196, %204 : vector<8x32xf32>
    %213 = arith.addf %211, %212 : vector<8x32xf32>
    %214 = math.tanh %213 : vector<8x32xf32>
    %215 = arith.mulf %210, %214 : vector<8x32xf32>
    %216 = arith.index_cast %155 : i32 to index
    %c0_62 = arith.constant 0 : index
    %217 = vector.load %arg13[%216, %c0_62] : memref<64x32xf32, #tpu.memory_space<vmem>>, vector<8x32xf32>
    tpu.vector_store %arg13[%216, %c0_62], %215 {strides = array<i32>} : memref<64x32xf32, #tpu.memory_space<vmem>>, vector<8x32xf32>,
    %c3_i32 = arith.constant 3 : i32
    %c8_i32_63 = arith.constant 8 : i32
    %218 = arith.muli %c3_i32, %c8_i32_63 : i32
    %219 = tpu.assume_multiple %218, 8 : i32
    %c7_i32_64 = arith.constant 7 : i32
    %220 = arith.subi %c7_i32_64, %c3_i32 : i32
    %c8_i32_65 = arith.constant 8 : i32
    %221 = arith.muli %220, %c8_i32_65 : i32
    %222 = tpu.assume_multiple %221, 8 : i32
    %cst_66 = arith.constant dense<0.000000e+00> : vector<8x128xf32>
    %223 = tpu.matmul %184, %13, %cst_66 {dimension_numbers = #tpu.dot_dimension_numbers<[1], [0], [0], [1], [0, 0, 1, 1], [], []>} : vector<8x32xf32>, vector<32x128xf32>, vector<8x128xf32> -> vector<8x128xf32>
    %224 = arith.index_cast %219 : i32 to index
    %c0_67 = arith.constant 0 : index
    %225 = vector.load %arg10[%224, %c0_67] : memref<64x128xf32, #tpu.memory_space<vmem>>, vector<8x128xf32>
    %226 = arith.addf %223, %225 : vector<8x128xf32>
    %227 = vector.extract_strided_slice %226 {offsets = [0, 0], sizes = [8, 32], strides = [1, 1]} : vector<8x128xf32> to vector<8x32xf32>
    %228 = arith.negf %227 : vector<8x32xf32>
    %229 = math.exp %228 : vector<8x32xf32>
    %cst_68 = arith.constant 1.000000e+00 : f32
    %230 = vector.broadcast %cst_68 : f32 to vector<8x32xf32>
    %231 = arith.addf %230, %229 : vector<8x32xf32>
    %232 = arith.divf %230, %231 : vector<8x32xf32>
    %233 = vector.extract_strided_slice %226 {offsets = [0, 32], sizes = [8, 32], strides = [1, 1]} : vector<8x128xf32> to vector<8x32xf32>
    %234 = arith.negf %233 : vector<8x32xf32>
    %235 = math.exp %234 : vector<8x32xf32>
    %cst_69 = arith.constant 1.000000e+00 : f32
    %236 = vector.broadcast %cst_69 : f32 to vector<8x32xf32>
    %237 = arith.addf %236, %235 : vector<8x32xf32>
    %238 = arith.divf %236, %237 : vector<8x32xf32>
    %239 = vector.extract_strided_slice %226 {offsets = [0, 64], sizes = [8, 32], strides = [1, 1]} : vector<8x128xf32> to vector<8x32xf32>
    %240 = math.tanh %239 : vector<8x32xf32>
    %241 = vector.extract_strided_slice %226 {offsets = [0, 96], sizes = [8, 32], strides = [1, 1]} : vector<8x128xf32> to vector<8x32xf32>
    %242 = arith.negf %241 : vector<8x32xf32>
    %243 = math.exp %242 : vector<8x32xf32>
    %cst_70 = arith.constant 1.000000e+00 : f32
    %244 = vector.broadcast %cst_70 : f32 to vector<8x32xf32>
    %245 = arith.addf %244, %243 : vector<8x32xf32>
    %246 = arith.divf %244, %245 : vector<8x32xf32>
    %247 = arith.mulf %238, %182 : vector<8x32xf32>
    %248 = arith.mulf %232, %240 : vector<8x32xf32>
    %249 = arith.addf %247, %248 : vector<8x32xf32>
    %250 = math.tanh %249 : vector<8x32xf32>
    %251 = arith.mulf %246, %250 : vector<8x32xf32>
    %252 = arith.index_cast %219 : i32 to index
    %c0_71 = arith.constant 0 : index
    %253 = vector.load %arg12[%252, %c0_71] : memref<64x32xf32, #tpu.memory_space<vmem>>, vector<8x32xf32>
    tpu.vector_store %arg12[%252, %c0_71], %251 {strides = array<i32>} : memref<64x32xf32, #tpu.memory_space<vmem>>, vector<8x32xf32>,
    %cst_72 = arith.constant dense<0.000000e+00> : vector<8x128xf32>
    %254 = tpu.matmul %215, %14, %cst_72 {dimension_numbers = #tpu.dot_dimension_numbers<[1], [0], [0], [1], [0, 0, 1, 1], [], []>} : vector<8x32xf32>, vector<32x128xf32>, vector<8x128xf32> -> vector<8x128xf32>
    %255 = arith.index_cast %222 : i32 to index
    %c0_73 = arith.constant 0 : index
    %256 = vector.load %arg11[%255, %c0_73] : memref<64x128xf32, #tpu.memory_space<vmem>>, vector<8x128xf32>
    %257 = arith.addf %254, %256 : vector<8x128xf32>
    %258 = vector.extract_strided_slice %257 {offsets = [0, 0], sizes = [8, 32], strides = [1, 1]} : vector<8x128xf32> to vector<8x32xf32>
    %259 = arith.negf %258 : vector<8x32xf32>
    %260 = math.exp %259 : vector<8x32xf32>
    %cst_74 = arith.constant 1.000000e+00 : f32
    %261 = vector.broadcast %cst_74 : f32 to vector<8x32xf32>
    %262 = arith.addf %261, %260 : vector<8x32xf32>
    %263 = arith.divf %261, %262 : vector<8x32xf32>
    %264 = vector.extract_strided_slice %257 {offsets = [0, 32], sizes = [8, 32], strides = [1, 1]} : vector<8x128xf32> to vector<8x32xf32>
    %265 = arith.negf %264 : vector<8x32xf32>
    %266 = math.exp %265 : vector<8x32xf32>
    %cst_75 = arith.constant 1.000000e+00 : f32
    %267 = vector.broadcast %cst_75 : f32 to vector<8x32xf32>
    %268 = arith.addf %267, %266 : vector<8x32xf32>
    %269 = arith.divf %267, %268 : vector<8x32xf32>
    %270 = vector.extract_strided_slice %257 {offsets = [0, 64], sizes = [8, 32], strides = [1, 1]} : vector<8x128xf32> to vector<8x32xf32>
    %271 = math.tanh %270 : vector<8x32xf32>
    %272 = vector.extract_strided_slice %257 {offsets = [0, 96], sizes = [8, 32], strides = [1, 1]} : vector<8x128xf32> to vector<8x32xf32>
    %273 = arith.negf %272 : vector<8x32xf32>
    %274 = math.exp %273 : vector<8x32xf32>
    %cst_76 = arith.constant 1.000000e+00 : f32
    %275 = vector.broadcast %cst_76 : f32 to vector<8x32xf32>
    %276 = arith.addf %275, %274 : vector<8x32xf32>
    %277 = arith.divf %275, %276 : vector<8x32xf32>
    %278 = arith.mulf %269, %213 : vector<8x32xf32>
    %279 = arith.mulf %263, %271 : vector<8x32xf32>
    %280 = arith.addf %278, %279 : vector<8x32xf32>
    %281 = math.tanh %280 : vector<8x32xf32>
    %282 = arith.mulf %277, %281 : vector<8x32xf32>
    %283 = arith.index_cast %222 : i32 to index
    %c0_77 = arith.constant 0 : index
    %284 = vector.load %arg13[%283, %c0_77] : memref<64x32xf32, #tpu.memory_space<vmem>>, vector<8x32xf32>
    tpu.vector_store %arg13[%283, %c0_77], %282 {strides = array<i32>} : memref<64x32xf32, #tpu.memory_space<vmem>>, vector<8x32xf32>,
    %c4_i32 = arith.constant 4 : i32
    %c8_i32_78 = arith.constant 8 : i32
    %285 = arith.muli %c4_i32, %c8_i32_78 : i32
    %286 = tpu.assume_multiple %285, 8 : i32
    %c7_i32_79 = arith.constant 7 : i32
    %287 = arith.subi %c7_i32_79, %c4_i32 : i32
    %c8_i32_80 = arith.constant 8 : i32
    %288 = arith.muli %287, %c8_i32_80 : i32
    %289 = tpu.assume_multiple %288, 8 : i32
    %cst_81 = arith.constant dense<0.000000e+00> : vector<8x128xf32>
    %290 = tpu.matmul %251, %13, %cst_81 {dimension_numbers = #tpu.dot_dimension_numbers<[1], [0], [0], [1], [0, 0, 1, 1], [], []>} : vector<8x32xf32>, vector<32x128xf32>, vector<8x128xf32> -> vector<8x128xf32>
    %291 = arith.index_cast %286 : i32 to index
    %c0_82 = arith.constant 0 : index
    %292 = vector.load %arg10[%291, %c0_82] : memref<64x128xf32, #tpu.memory_space<vmem>>, vector<8x128xf32>
    %293 = arith.addf %290, %292 : vector<8x128xf32>
    %294 = vector.extract_strided_slice %293 {offsets = [0, 0], sizes = [8, 32], strides = [1, 1]} : vector<8x128xf32> to vector<8x32xf32>
    %295 = arith.negf %294 : vector<8x32xf32>
    %296 = math.exp %295 : vector<8x32xf32>
    %cst_83 = arith.constant 1.000000e+00 : f32
    %297 = vector.broadcast %cst_83 : f32 to vector<8x32xf32>
    %298 = arith.addf %297, %296 : vector<8x32xf32>
    %299 = arith.divf %297, %298 : vector<8x32xf32>
    %300 = vector.extract_strided_slice %293 {offsets = [0, 32], sizes = [8, 32], strides = [1, 1]} : vector<8x128xf32> to vector<8x32xf32>
    %301 = arith.negf %300 : vector<8x32xf32>
    %302 = math.exp %301 : vector<8x32xf32>
    %cst_84 = arith.constant 1.000000e+00 : f32
    %303 = vector.broadcast %cst_84 : f32 to vector<8x32xf32>
    %304 = arith.addf %303, %302 : vector<8x32xf32>
    %305 = arith.divf %303, %304 : vector<8x32xf32>
    %306 = vector.extract_strided_slice %293 {offsets = [0, 64], sizes = [8, 32], strides = [1, 1]} : vector<8x128xf32> to vector<8x32xf32>
    %307 = math.tanh %306 : vector<8x32xf32>
    %308 = vector.extract_strided_slice %293 {offsets = [0, 96], sizes = [8, 32], strides = [1, 1]} : vector<8x128xf32> to vector<8x32xf32>
    %309 = arith.negf %308 : vector<8x32xf32>
    %310 = math.exp %309 : vector<8x32xf32>
    %cst_85 = arith.constant 1.000000e+00 : f32
    %311 = vector.broadcast %cst_85 : f32 to vector<8x32xf32>
    %312 = arith.addf %311, %310 : vector<8x32xf32>
    %313 = arith.divf %311, %312 : vector<8x32xf32>
    %314 = arith.mulf %305, %249 : vector<8x32xf32>
    %315 = arith.mulf %299, %307 : vector<8x32xf32>
    %316 = arith.addf %314, %315 : vector<8x32xf32>
    %317 = math.tanh %316 : vector<8x32xf32>
    %318 = arith.mulf %313, %317 : vector<8x32xf32>
    %319 = arith.index_cast %286 : i32 to index
    %c0_86 = arith.constant 0 : index
    %320 = vector.load %arg12[%319, %c0_86] : memref<64x32xf32, #tpu.memory_space<vmem>>, vector<8x32xf32>
    tpu.vector_store %arg12[%319, %c0_86], %318 {strides = array<i32>} : memref<64x32xf32, #tpu.memory_space<vmem>>, vector<8x32xf32>,
    %cst_87 = arith.constant dense<0.000000e+00> : vector<8x128xf32>
    %321 = tpu.matmul %282, %14, %cst_87 {dimension_numbers = #tpu.dot_dimension_numbers<[1], [0], [0], [1], [0, 0, 1, 1], [], []>} : vector<8x32xf32>, vector<32x128xf32>, vector<8x128xf32> -> vector<8x128xf32>
    %322 = arith.index_cast %289 : i32 to index
    %c0_88 = arith.constant 0 : index
    %323 = vector.load %arg11[%322, %c0_88] : memref<64x128xf32, #tpu.memory_space<vmem>>, vector<8x128xf32>
    %324 = arith.addf %321, %323 : vector<8x128xf32>
    %325 = vector.extract_strided_slice %324 {offsets = [0, 0], sizes = [8, 32], strides = [1, 1]} : vector<8x128xf32> to vector<8x32xf32>
    %326 = arith.negf %325 : vector<8x32xf32>
    %327 = math.exp %326 : vector<8x32xf32>
    %cst_89 = arith.constant 1.000000e+00 : f32
    %328 = vector.broadcast %cst_89 : f32 to vector<8x32xf32>
    %329 = arith.addf %328, %327 : vector<8x32xf32>
    %330 = arith.divf %328, %329 : vector<8x32xf32>
    %331 = vector.extract_strided_slice %324 {offsets = [0, 32], sizes = [8, 32], strides = [1, 1]} : vector<8x128xf32> to vector<8x32xf32>
    %332 = arith.negf %331 : vector<8x32xf32>
    %333 = math.exp %332 : vector<8x32xf32>
    %cst_90 = arith.constant 1.000000e+00 : f32
    %334 = vector.broadcast %cst_90 : f32 to vector<8x32xf32>
    %335 = arith.addf %334, %333 : vector<8x32xf32>
    %336 = arith.divf %334, %335 : vector<8x32xf32>
    %337 = vector.extract_strided_slice %324 {offsets = [0, 64], sizes = [8, 32], strides = [1, 1]} : vector<8x128xf32> to vector<8x32xf32>
    %338 = math.tanh %337 : vector<8x32xf32>
    %339 = vector.extract_strided_slice %324 {offsets = [0, 96], sizes = [8, 32], strides = [1, 1]} : vector<8x128xf32> to vector<8x32xf32>
    %340 = arith.negf %339 : vector<8x32xf32>
    %341 = math.exp %340 : vector<8x32xf32>
    %cst_91 = arith.constant 1.000000e+00 : f32
    %342 = vector.broadcast %cst_91 : f32 to vector<8x32xf32>
    %343 = arith.addf %342, %341 : vector<8x32xf32>
    %344 = arith.divf %342, %343 : vector<8x32xf32>
    %345 = arith.mulf %336, %280 : vector<8x32xf32>
    %346 = arith.mulf %330, %338 : vector<8x32xf32>
    %347 = arith.addf %345, %346 : vector<8x32xf32>
    %348 = math.tanh %347 : vector<8x32xf32>
    %349 = arith.mulf %344, %348 : vector<8x32xf32>
    %350 = arith.index_cast %289 : i32 to index
    %c0_92 = arith.constant 0 : index
    %351 = vector.load %arg13[%350, %c0_92] : memref<64x32xf32, #tpu.memory_space<vmem>>, vector<8x32xf32>
    tpu.vector_store %arg13[%350, %c0_92], %349 {strides = array<i32>} : memref<64x32xf32, #tpu.memory_space<vmem>>, vector<8x32xf32>,
    %c5_i32 = arith.constant 5 : i32
    %c8_i32_93 = arith.constant 8 : i32
    %352 = arith.muli %c5_i32, %c8_i32_93 : i32
    %353 = tpu.assume_multiple %352, 8 : i32
    %c7_i32_94 = arith.constant 7 : i32
    %354 = arith.subi %c7_i32_94, %c5_i32 : i32
    %c8_i32_95 = arith.constant 8 : i32
    %355 = arith.muli %354, %c8_i32_95 : i32
    %356 = tpu.assume_multiple %355, 8 : i32
    %cst_96 = arith.constant dense<0.000000e+00> : vector<8x128xf32>
    %357 = tpu.matmul %318, %13, %cst_96 {dimension_numbers = #tpu.dot_dimension_numbers<[1], [0], [0], [1], [0, 0, 1, 1], [], []>} : vector<8x32xf32>, vector<32x128xf32>, vector<8x128xf32> -> vector<8x128xf32>
    %358 = arith.index_cast %353 : i32 to index
    %c0_97 = arith.constant 0 : index
    %359 = vector.load %arg10[%358, %c0_97] : memref<64x128xf32, #tpu.memory_space<vmem>>, vector<8x128xf32>
    %360 = arith.addf %357, %359 : vector<8x128xf32>
    %361 = vector.extract_strided_slice %360 {offsets = [0, 0], sizes = [8, 32], strides = [1, 1]} : vector<8x128xf32> to vector<8x32xf32>
    %362 = arith.negf %361 : vector<8x32xf32>
    %363 = math.exp %362 : vector<8x32xf32>
    %cst_98 = arith.constant 1.000000e+00 : f32
    %364 = vector.broadcast %cst_98 : f32 to vector<8x32xf32>
    %365 = arith.addf %364, %363 : vector<8x32xf32>
    %366 = arith.divf %364, %365 : vector<8x32xf32>
    %367 = vector.extract_strided_slice %360 {offsets = [0, 32], sizes = [8, 32], strides = [1, 1]} : vector<8x128xf32> to vector<8x32xf32>
    %368 = arith.negf %367 : vector<8x32xf32>
    %369 = math.exp %368 : vector<8x32xf32>
    %cst_99 = arith.constant 1.000000e+00 : f32
    %370 = vector.broadcast %cst_99 : f32 to vector<8x32xf32>
    %371 = arith.addf %370, %369 : vector<8x32xf32>
    %372 = arith.divf %370, %371 : vector<8x32xf32>
    %373 = vector.extract_strided_slice %360 {offsets = [0, 64], sizes = [8, 32], strides = [1, 1]} : vector<8x128xf32> to vector<8x32xf32>
    %374 = math.tanh %373 : vector<8x32xf32>
    %375 = vector.extract_strided_slice %360 {offsets = [0, 96], sizes = [8, 32], strides = [1, 1]} : vector<8x128xf32> to vector<8x32xf32>
    %376 = arith.negf %375 : vector<8x32xf32>
    %377 = math.exp %376 : vector<8x32xf32>
    %cst_100 = arith.constant 1.000000e+00 : f32
    %378 = vector.broadcast %cst_100 : f32 to vector<8x32xf32>
    %379 = arith.addf %378, %377 : vector<8x32xf32>
    %380 = arith.divf %378, %379 : vector<8x32xf32>
    %381 = arith.mulf %372, %316 : vector<8x32xf32>
    %382 = arith.mulf %366, %374 : vector<8x32xf32>
    %383 = arith.addf %381, %382 : vector<8x32xf32>
    %384 = math.tanh %383 : vector<8x32xf32>
    %385 = arith.mulf %380, %384 : vector<8x32xf32>
    %386 = arith.index_cast %353 : i32 to index
    %c0_101 = arith.constant 0 : index
    %387 = vector.load %arg12[%386, %c0_101] : memref<64x32xf32, #tpu.memory_space<vmem>>, vector<8x32xf32>
    tpu.vector_store %arg12[%386, %c0_101], %385 {strides = array<i32>} : memref<64x32xf32, #tpu.memory_space<vmem>>, vector<8x32xf32>,
    %cst_102 = arith.constant dense<0.000000e+00> : vector<8x128xf32>
    %388 = tpu.matmul %349, %14, %cst_102 {dimension_numbers = #tpu.dot_dimension_numbers<[1], [0], [0], [1], [0, 0, 1, 1], [], []>} : vector<8x32xf32>, vector<32x128xf32>, vector<8x128xf32> -> vector<8x128xf32>
    %389 = arith.index_cast %356 : i32 to index
    %c0_103 = arith.constant 0 : index
    %390 = vector.load %arg11[%389, %c0_103] : memref<64x128xf32, #tpu.memory_space<vmem>>, vector<8x128xf32>
    %391 = arith.addf %388, %390 : vector<8x128xf32>
    %392 = vector.extract_strided_slice %391 {offsets = [0, 0], sizes = [8, 32], strides = [1, 1]} : vector<8x128xf32> to vector<8x32xf32>
    %393 = arith.negf %392 : vector<8x32xf32>
    %394 = math.exp %393 : vector<8x32xf32>
    %cst_104 = arith.constant 1.000000e+00 : f32
    %395 = vector.broadcast %cst_104 : f32 to vector<8x32xf32>
    %396 = arith.addf %395, %394 : vector<8x32xf32>
    %397 = arith.divf %395, %396 : vector<8x32xf32>
    %398 = vector.extract_strided_slice %391 {offsets = [0, 32], sizes = [8, 32], strides = [1, 1]} : vector<8x128xf32> to vector<8x32xf32>
    %399 = arith.negf %398 : vector<8x32xf32>
    %400 = math.exp %399 : vector<8x32xf32>
    %cst_105 = arith.constant 1.000000e+00 : f32
    %401 = vector.broadcast %cst_105 : f32 to vector<8x32xf32>
    %402 = arith.addf %401, %400 : vector<8x32xf32>
    %403 = arith.divf %401, %402 : vector<8x32xf32>
    %404 = vector.extract_strided_slice %391 {offsets = [0, 64], sizes = [8, 32], strides = [1, 1]} : vector<8x128xf32> to vector<8x32xf32>
    %405 = math.tanh %404 : vector<8x32xf32>
    %406 = vector.extract_strided_slice %391 {offsets = [0, 96], sizes = [8, 32], strides = [1, 1]} : vector<8x128xf32> to vector<8x32xf32>
    %407 = arith.negf %406 : vector<8x32xf32>
    %408 = math.exp %407 : vector<8x32xf32>
    %cst_106 = arith.constant 1.000000e+00 : f32
    %409 = vector.broadcast %cst_106 : f32 to vector<8x32xf32>
    %410 = arith.addf %409, %408 : vector<8x32xf32>
    %411 = arith.divf %409, %410 : vector<8x32xf32>
    %412 = arith.mulf %403, %347 : vector<8x32xf32>
    %413 = arith.mulf %397, %405 : vector<8x32xf32>
    %414 = arith.addf %412, %413 : vector<8x32xf32>
    %415 = math.tanh %414 : vector<8x32xf32>
    %416 = arith.mulf %411, %415 : vector<8x32xf32>
    %417 = arith.index_cast %356 : i32 to index
    %c0_107 = arith.constant 0 : index
    %418 = vector.load %arg13[%417, %c0_107] : memref<64x32xf32, #tpu.memory_space<vmem>>, vector<8x32xf32>
    tpu.vector_store %arg13[%417, %c0_107], %416 {strides = array<i32>} : memref<64x32xf32, #tpu.memory_space<vmem>>, vector<8x32xf32>,
    %c6_i32 = arith.constant 6 : i32
    %c8_i32_108 = arith.constant 8 : i32
    %419 = arith.muli %c6_i32, %c8_i32_108 : i32
    %420 = tpu.assume_multiple %419, 8 : i32
    %c7_i32_109 = arith.constant 7 : i32
    %421 = arith.subi %c7_i32_109, %c6_i32 : i32
    %c8_i32_110 = arith.constant 8 : i32
    %422 = arith.muli %421, %c8_i32_110 : i32
    %423 = tpu.assume_multiple %422, 8 : i32
    %cst_111 = arith.constant dense<0.000000e+00> : vector<8x128xf32>
    %424 = tpu.matmul %385, %13, %cst_111 {dimension_numbers = #tpu.dot_dimension_numbers<[1], [0], [0], [1], [0, 0, 1, 1], [], []>} : vector<8x32xf32>, vector<32x128xf32>, vector<8x128xf32> -> vector<8x128xf32>
    %425 = arith.index_cast %420 : i32 to index
    %c0_112 = arith.constant 0 : index
    %426 = vector.load %arg10[%425, %c0_112] : memref<64x128xf32, #tpu.memory_space<vmem>>, vector<8x128xf32>
    %427 = arith.addf %424, %426 : vector<8x128xf32>
    %428 = vector.extract_strided_slice %427 {offsets = [0, 0], sizes = [8, 32], strides = [1, 1]} : vector<8x128xf32> to vector<8x32xf32>
    %429 = arith.negf %428 : vector<8x32xf32>
    %430 = math.exp %429 : vector<8x32xf32>
    %cst_113 = arith.constant 1.000000e+00 : f32
    %431 = vector.broadcast %cst_113 : f32 to vector<8x32xf32>
    %432 = arith.addf %431, %430 : vector<8x32xf32>
    %433 = arith.divf %431, %432 : vector<8x32xf32>
    %434 = vector.extract_strided_slice %427 {offsets = [0, 32], sizes = [8, 32], strides = [1, 1]} : vector<8x128xf32> to vector<8x32xf32>
    %435 = arith.negf %434 : vector<8x32xf32>
    %436 = math.exp %435 : vector<8x32xf32>
    %cst_114 = arith.constant 1.000000e+00 : f32
    %437 = vector.broadcast %cst_114 : f32 to vector<8x32xf32>
    %438 = arith.addf %437, %436 : vector<8x32xf32>
    %439 = arith.divf %437, %438 : vector<8x32xf32>
    %440 = vector.extract_strided_slice %427 {offsets = [0, 64], sizes = [8, 32], strides = [1, 1]} : vector<8x128xf32> to vector<8x32xf32>
    %441 = math.tanh %440 : vector<8x32xf32>
    %442 = vector.extract_strided_slice %427 {offsets = [0, 96], sizes = [8, 32], strides = [1, 1]} : vector<8x128xf32> to vector<8x32xf32>
    %443 = arith.negf %442 : vector<8x32xf32>
    %444 = math.exp %443 : vector<8x32xf32>
    %cst_115 = arith.constant 1.000000e+00 : f32
    %445 = vector.broadcast %cst_115 : f32 to vector<8x32xf32>
    %446 = arith.addf %445, %444 : vector<8x32xf32>
    %447 = arith.divf %445, %446 : vector<8x32xf32>
    %448 = arith.mulf %439, %383 : vector<8x32xf32>
    %449 = arith.mulf %433, %441 : vector<8x32xf32>
    %450 = arith.addf %448, %449 : vector<8x32xf32>
    %451 = math.tanh %450 : vector<8x32xf32>
    %452 = arith.mulf %447, %451 : vector<8x32xf32>
    %453 = arith.index_cast %420 : i32 to index
    %c0_116 = arith.constant 0 : index
    %454 = vector.load %arg12[%453, %c0_116] : memref<64x32xf32, #tpu.memory_space<vmem>>, vector<8x32xf32>
    tpu.vector_store %arg12[%453, %c0_116], %452 {strides = array<i32>} : memref<64x32xf32, #tpu.memory_space<vmem>>, vector<8x32xf32>,
    %cst_117 = arith.constant dense<0.000000e+00> : vector<8x128xf32>
    %455 = tpu.matmul %416, %14, %cst_117 {dimension_numbers = #tpu.dot_dimension_numbers<[1], [0], [0], [1], [0, 0, 1, 1], [], []>} : vector<8x32xf32>, vector<32x128xf32>, vector<8x128xf32> -> vector<8x128xf32>
    %456 = arith.index_cast %423 : i32 to index
    %c0_118 = arith.constant 0 : index
    %457 = vector.load %arg11[%456, %c0_118] : memref<64x128xf32, #tpu.memory_space<vmem>>, vector<8x128xf32>
    %458 = arith.addf %455, %457 : vector<8x128xf32>
    %459 = vector.extract_strided_slice %458 {offsets = [0, 0], sizes = [8, 32], strides = [1, 1]} : vector<8x128xf32> to vector<8x32xf32>
    %460 = arith.negf %459 : vector<8x32xf32>
    %461 = math.exp %460 : vector<8x32xf32>
    %cst_119 = arith.constant 1.000000e+00 : f32
    %462 = vector.broadcast %cst_119 : f32 to vector<8x32xf32>
    %463 = arith.addf %462, %461 : vector<8x32xf32>
    %464 = arith.divf %462, %463 : vector<8x32xf32>
    %465 = vector.extract_strided_slice %458 {offsets = [0, 32], sizes = [8, 32], strides = [1, 1]} : vector<8x128xf32> to vector<8x32xf32>
    %466 = arith.negf %465 : vector<8x32xf32>
    %467 = math.exp %466 : vector<8x32xf32>
    %cst_120 = arith.constant 1.000000e+00 : f32
    %468 = vector.broadcast %cst_120 : f32 to vector<8x32xf32>
    %469 = arith.addf %468, %467 : vector<8x32xf32>
    %470 = arith.divf %468, %469 : vector<8x32xf32>
    %471 = vector.extract_strided_slice %458 {offsets = [0, 64], sizes = [8, 32], strides = [1, 1]} : vector<8x128xf32> to vector<8x32xf32>
    %472 = math.tanh %471 : vector<8x32xf32>
    %473 = vector.extract_strided_slice %458 {offsets = [0, 96], sizes = [8, 32], strides = [1, 1]} : vector<8x128xf32> to vector<8x32xf32>
    %474 = arith.negf %473 : vector<8x32xf32>
    %475 = math.exp %474 : vector<8x32xf32>
    %cst_121 = arith.constant 1.000000e+00 : f32
    %476 = vector.broadcast %cst_121 : f32 to vector<8x32xf32>
    %477 = arith.addf %476, %475 : vector<8x32xf32>
    %478 = arith.divf %476, %477 : vector<8x32xf32>
    %479 = arith.mulf %470, %414 : vector<8x32xf32>
    %480 = arith.mulf %464, %472 : vector<8x32xf32>
    %481 = arith.addf %479, %480 : vector<8x32xf32>
    %482 = math.tanh %481 : vector<8x32xf32>
    %483 = arith.mulf %478, %482 : vector<8x32xf32>
    %484 = arith.index_cast %423 : i32 to index
    %c0_122 = arith.constant 0 : index
    %485 = vector.load %arg13[%484, %c0_122] : memref<64x32xf32, #tpu.memory_space<vmem>>, vector<8x32xf32>
    tpu.vector_store %arg13[%484, %c0_122], %483 {strides = array<i32>} : memref<64x32xf32, #tpu.memory_space<vmem>>, vector<8x32xf32>,
    %c7_i32_123 = arith.constant 7 : i32
    %c8_i32_124 = arith.constant 8 : i32
    %486 = arith.muli %c7_i32_123, %c8_i32_124 : i32
    %487 = tpu.assume_multiple %486, 8 : i32
    %c7_i32_125 = arith.constant 7 : i32
    %488 = arith.subi %c7_i32_125, %c7_i32_123 : i32
    %c8_i32_126 = arith.constant 8 : i32
    %489 = arith.muli %488, %c8_i32_126 : i32
    %490 = tpu.assume_multiple %489, 8 : i32
    %cst_127 = arith.constant dense<0.000000e+00> : vector<8x128xf32>
    %491 = tpu.matmul %452, %13, %cst_127 {dimension_numbers = #tpu.dot_dimension_numbers<[1], [0], [0], [1], [0, 0, 1, 1], [], []>} : vector<8x32xf32>, vector<32x128xf32>, vector<8x128xf32> -> vector<8x128xf32>
    %492 = arith.index_cast %487 : i32 to index
    %c0_128 = arith.constant 0 : index
    %493 = vector.load %arg10[%492, %c0_128] : memref<64x128xf32, #tpu.memory_space<vmem>>, vector<8x128xf32>
    %494 = arith.addf %491, %493 : vector<8x128xf32>
    %495 = vector.extract_strided_slice %494 {offsets = [0, 0], sizes = [8, 32], strides = [1, 1]} : vector<8x128xf32> to vector<8x32xf32>
    %496 = arith.negf %495 : vector<8x32xf32>
    %497 = math.exp %496 : vector<8x32xf32>
    %cst_129 = arith.constant 1.000000e+00 : f32
    %498 = vector.broadcast %cst_129 : f32 to vector<8x32xf32>
    %499 = arith.addf %498, %497 : vector<8x32xf32>
    %500 = arith.divf %498, %499 : vector<8x32xf32>
    %501 = vector.extract_strided_slice %494 {offsets = [0, 32], sizes = [8, 32], strides = [1, 1]} : vector<8x128xf32> to vector<8x32xf32>
    %502 = arith.negf %501 : vector<8x32xf32>
    %503 = math.exp %502 : vector<8x32xf32>
    %cst_130 = arith.constant 1.000000e+00 : f32
    %504 = vector.broadcast %cst_130 : f32 to vector<8x32xf32>
    %505 = arith.addf %504, %503 : vector<8x32xf32>
    %506 = arith.divf %504, %505 : vector<8x32xf32>
    %507 = vector.extract_strided_slice %494 {offsets = [0, 64], sizes = [8, 32], strides = [1, 1]} : vector<8x128xf32> to vector<8x32xf32>
    %508 = math.tanh %507 : vector<8x32xf32>
    %509 = vector.extract_strided_slice %494 {offsets = [0, 96], sizes = [8, 32], strides = [1, 1]} : vector<8x128xf32> to vector<8x32xf32>
    %510 = arith.negf %509 : vector<8x32xf32>
    %511 = math.exp %510 : vector<8x32xf32>
    %cst_131 = arith.constant 1.000000e+00 : f32
    %512 = vector.broadcast %cst_131 : f32 to vector<8x32xf32>
    %513 = arith.addf %512, %511 : vector<8x32xf32>
    %514 = arith.divf %512, %513 : vector<8x32xf32>
    %515 = arith.mulf %506, %450 : vector<8x32xf32>
    %516 = arith.mulf %500, %508 : vector<8x32xf32>
    %517 = arith.addf %515, %516 : vector<8x32xf32>
    %518 = math.tanh %517 : vector<8x32xf32>
    %519 = arith.mulf %514, %518 : vector<8x32xf32>
    %520 = arith.index_cast %487 : i32 to index
    %c0_132 = arith.constant 0 : index
    %521 = vector.load %arg12[%520, %c0_132] : memref<64x32xf32, #tpu.memory_space<vmem>>, vector<8x32xf32>
    tpu.vector_store %arg12[%520, %c0_132], %519 {strides = array<i32>} : memref<64x32xf32, #tpu.memory_space<vmem>>, vector<8x32xf32>,
    %cst_133 = arith.constant dense<0.000000e+00> : vector<8x128xf32>
    %522 = tpu.matmul %483, %14, %cst_133 {dimension_numbers = #tpu.dot_dimension_numbers<[1], [0], [0], [1], [0, 0, 1, 1], [], []>} : vector<8x32xf32>, vector<32x128xf32>, vector<8x128xf32> -> vector<8x128xf32>
    %523 = arith.index_cast %490 : i32 to index
    %c0_134 = arith.constant 0 : index
    %524 = vector.load %arg11[%523, %c0_134] : memref<64x128xf32, #tpu.memory_space<vmem>>, vector<8x128xf32>
    %525 = arith.addf %522, %524 : vector<8x128xf32>
    %526 = vector.extract_strided_slice %525 {offsets = [0, 0], sizes = [8, 32], strides = [1, 1]} : vector<8x128xf32> to vector<8x32xf32>
    %527 = arith.negf %526 : vector<8x32xf32>
    %528 = math.exp %527 : vector<8x32xf32>
    %cst_135 = arith.constant 1.000000e+00 : f32
    %529 = vector.broadcast %cst_135 : f32 to vector<8x32xf32>
    %530 = arith.addf %529, %528 : vector<8x32xf32>
    %531 = arith.divf %529, %530 : vector<8x32xf32>
    %532 = vector.extract_strided_slice %525 {offsets = [0, 32], sizes = [8, 32], strides = [1, 1]} : vector<8x128xf32> to vector<8x32xf32>
    %533 = arith.negf %532 : vector<8x32xf32>
    %534 = math.exp %533 : vector<8x32xf32>
    %cst_136 = arith.constant 1.000000e+00 : f32
    %535 = vector.broadcast %cst_136 : f32 to vector<8x32xf32>
    %536 = arith.addf %535, %534 : vector<8x32xf32>
    %537 = arith.divf %535, %536 : vector<8x32xf32>
    %538 = vector.extract_strided_slice %525 {offsets = [0, 64], sizes = [8, 32], strides = [1, 1]} : vector<8x128xf32> to vector<8x32xf32>
    %539 = math.tanh %538 : vector<8x32xf32>
    %540 = vector.extract_strided_slice %525 {offsets = [0, 96], sizes = [8, 32], strides = [1, 1]} : vector<8x128xf32> to vector<8x32xf32>
    %541 = arith.negf %540 : vector<8x32xf32>
    %542 = math.exp %541 : vector<8x32xf32>
    %cst_137 = arith.constant 1.000000e+00 : f32
    %543 = vector.broadcast %cst_137 : f32 to vector<8x32xf32>
    %544 = arith.addf %543, %542 : vector<8x32xf32>
    %545 = arith.divf %543, %544 : vector<8x32xf32>
    %546 = arith.mulf %537, %481 : vector<8x32xf32>
    %547 = arith.mulf %531, %539 : vector<8x32xf32>
    %548 = arith.addf %546, %547 : vector<8x32xf32>
    %549 = math.tanh %548 : vector<8x32xf32>
    %550 = arith.mulf %545, %549 : vector<8x32xf32>
    %551 = arith.index_cast %490 : i32 to index
    %c0_138 = arith.constant 0 : index
    %552 = vector.load %arg13[%551, %c0_138] : memref<64x32xf32, #tpu.memory_space<vmem>>, vector<8x32xf32>
    tpu.vector_store %arg13[%551, %c0_138], %550 {strides = array<i32>} : memref<64x32xf32, #tpu.memory_space<vmem>>, vector<8x32xf32>,
    %c8_i32_139 = arith.constant 8 : i32
    %c0_140 = arith.constant 0 : index
    %c0_141 = arith.constant 0 : index
    %553 = vector.load %arg12[%c0_140, %c0_141] : memref<64x32xf32, #tpu.memory_space<vmem>>, vector<64x32xf32>
    %c0_142 = arith.constant 0 : index
    %c0_143 = arith.constant 0 : index
    %554 = vector.load %arg7[%c0_142, %c0_143] : memref<32x32xf32, #tpu.memory_space<vmem>>, vector<32x32xf32>
    %cst_144 = arith.constant dense<0.000000e+00> : vector<64x32xf32>
    %555 = tpu.matmul %553, %554, %cst_144 {dimension_numbers = #tpu.dot_dimension_numbers<[1], [0], [0], [1], [0, 0, 1, 1], [], []>} : vector<64x32xf32>, vector<32x32xf32>, vector<64x32xf32> -> vector<64x32xf32>
    %c0_145 = arith.constant 0 : index
    %c0_146 = arith.constant 0 : index
    %556 = vector.load %arg13[%c0_145, %c0_146] : memref<64x32xf32, #tpu.memory_space<vmem>>, vector<64x32xf32>
    %c0_147 = arith.constant 0 : index
    %c0_148 = arith.constant 0 : index
    %557 = vector.load %arg8[%c0_147, %c0_148] : memref<32x32xf32, #tpu.memory_space<vmem>>, vector<32x32xf32>
    %cst_149 = arith.constant dense<0.000000e+00> : vector<64x32xf32>
    %558 = tpu.matmul %556, %557, %cst_149 {dimension_numbers = #tpu.dot_dimension_numbers<[1], [0], [0], [1], [0, 0, 1, 1], [], []>} : vector<64x32xf32>, vector<32x32xf32>, vector<64x32xf32> -> vector<64x32xf32>
    %559 = arith.addf %555, %558 : vector<64x32xf32>
    %c0_150 = arith.constant 0 : index
    %c0_151 = arith.constant 0 : index
    %560 = vector.load %arg9[%c0_150, %c0_151] : memref<64x32xf32, #tpu.memory_space<vmem>>, vector<64x32xf32>
    tpu.vector_store %arg9[%c0_150, %c0_151], %559 {strides = array<i32>} : memref<64x32xf32, #tpu.memory_space<vmem>>, vector<64x32xf32>,
    return
  }
}

</mosaic_0001>

<bundles_post_ra>
// kernel: tpu_custom_call.1
= control target key start
LH: loop header
LB: loop body
LE: loop exit
PB: predicated region body
PF: predicated region fallthrough
CT: control target
= control target key end

     0   :  { %14 = vsyncpa [#allocation7], 0  ;;  %s3534_s0 = inlined_call_operand.vmem [shape: f32[64,32], index: 0, kind: input, shape index: {}]   ;;  %s3535_s1 = inlined_call_operand.vmem [shape: f32[32,128], index: 1, kind: input, shape index: {}]   ;;  %s3536_s2 = inlined_call_operand.vmem [shape: f32[32,128], index: 2, kind: input, shape index: {}]   ;;  %s3537_s3 = inlined_call_operand.vmem [shape: f32[1,128], index: 3, kind: input, shape index: {}]   ;;  %s3538_s4 = inlined_call_operand.vmem [shape: f32[32,128], index: 4, kind: input, shape index: {}]   ;;  %s3539_s5 = inlined_call_operand.hbm [shape: f32[32,128], index: 5, kind: input, shape index: {}]   ;;  %s3540_s6 = inlined_call_operand.vmem [shape: f32[1,128], index: 6, kind: input, shape index: {}]   ;;  %s3541_s7 = inlined_call_operand.hbm [shape: f32[32,32], index: 7, kind: input, shape index: {}]   ;;  %s3542_s8 = inlined_call_operand.hbm [shape: f32[32,32], index: 8, kind: input, shape index: {}]   ;;  %s3543_s9 = inlined_call_operand.vmem [shape: f32[64,32], index: 9, kind: output, shape index: {}]  }
   0x1   :  { %15 = vsyncpa [#allocation9], 0  ;;  %s2967_s30 = smov [#allocation8]   ;;  %s2968_s11 = smov [#allocation6]  }
   0x2   :  { %s45_s10 = sshll.u32 %s2967_s30, 4  ;;  %s31_s12 = sshll.u32 %s2968_s11, 4  ;;  %s46_s10 = int_to_ptr.vmem [resolvable:$true] %s45_s10  ;;  %s32_s12 = int_to_ptr.vmem [resolvable:$true] %s31_s12 }
   0x3   :  { %s2911_s13 = scalar_lea.vmem %s46_s10, 512  ;;  %p2916_p1 = scmp.lt.s32.totalorder %s46_s10, %s46_s10 }
   0x4   :  { %p2912_p0 = scmp.ne.s32.totalorder %s46_s10, %s2911_s13  ;;  %p2917_p2 = scmp.lt.s32.totalorder %s2911_s13, %s2911_s13 }
   0x6   :  { %p2918_p3 = por %p2917_p2, %p2916_p1 }
   0x8   :  { %p2919_p4 = pnand %p2918_p3, %p2912_p0 }
   0xa   :  { %2922 = shalt.err (!%p2919_p4)
}
   0xb   :  { %s2969_s14 = smov 128   ;;  %s2970_s15 = smov 8  }
   0xc   :  { %51 = dma.hbm_to_vmem [thread:$0]  %s3541_s7, 512, %s46_s10, [#allocation9], %s2969_s14, %s2969_s14, %s2970_s15  }
   0xd   :  { %s2931_s18 = scalar_lea.vmem %s32_s12, 512  ;;  %p2936_p6 = scmp.lt.s32.totalorder %s32_s12, %s32_s12 }
   0xe   :  { %p2932_p5 = scmp.ne.s32.totalorder %s32_s12, %s2931_s18  ;;  %p2937_p7 = scmp.lt.s32.totalorder %s2931_s18, %s2931_s18 }
  0x10   :  { %p2938_p8 = por %p2937_p7, %p2936_p6 }
  0x12   :  { %p2939_p9 = pnand %p2938_p8, %p2932_p5 }
  0x14   :  { %2942 = shalt.err (!%p2939_p9)
}
  0x15   :  { %37 = dma.hbm_to_vmem [thread:$0]  %s3539_s5, 512, %s32_s12, [#allocation7], %s2969_s14, %s2969_s14, %s2970_s15  }
  0x16   :  { %s2971_s21 = smov [#allocation10]  }
  0x17   :  { %s57_s22 = sshll.u32 %s2971_s21, 4  ;;  %s58_s22 = int_to_ptr.vmem [resolvable:$true] %s57_s22 }
  0x18   :  { %s2951_s23 = scalar_lea.vmem %s58_s22, 512  ;;  %p2956_p11 = scmp.lt.s32.totalorder %s58_s22, %s58_s22 }
  0x19   :  { %p2952_p10 = scmp.ne.s32.totalorder %s58_s22, %s2951_s23  ;;  %p2957_p12 = scmp.lt.s32.totalorder %s2951_s23, %s2951_s23 }
  0x1b   :  { %p2958_p13 = por %p2957_p12, %p2956_p11 }
  0x1d   :  { %p2959_p0 = pnand %p2958_p13, %p2952_p10 }
  0x1f   :  { %2962 = shalt.err (!%p2959_p0)
}
  0x20   :  { %63 = dma.hbm_to_vmem [thread:$0]  %s3542_s8, 512, %s58_s22, [#allocation9], %s2969_s14, %s2969_s14, %s2970_s15  }
  0x21   :  { %2963 = dma.done.wait [#allocation7], 512  }
  0x22   :  { %2964 = vsyncadd [#allocation7], 4294966784 }
  0x23   :  { %2965 = dma.done.wait [#allocation9], 1024  }
  0x24   :  { %2966 = vsyncadd [#allocation9], 4294966272  ;;  %v84_v0 = vld [vmem:[%s3535_s1 + $0x18] sm:$0xff]  ;;  %v83_v2 = vld [vmem:[%s3535_s1 + $0x10] sm:$0xff]  ;;  %vm92_vm0 = vcmask 261120   ;;  %v2972_v12 = vmov 0.0  }
  0x25   :  { %v233_v1 = vld [vmem:[%s3538_s4 + $0x18] sm:$0xff]  ;;  %2509 = vmatprep.subr.mxu0 %v84_v0  ;;  %v232_v3 = vld [vmem:[%s3538_s4 + $0x10] sm:$0xff]  ;;  %v82_v4 = vld [vmem:[%s3535_s1 + $0x8] sm:$0xff]  ;;  %vm2973_vm1 = vmmov 0  }
  0x26   :  { %2529 = vmatprep.subr.mxu1 %v233_v1  ;;  %2510 = vmatpush3.msra.mxu0 %v84_v0  ;;  %v231_v5 = vld [vmem:[%s3538_s4 + $0x8] sm:$0xff]  ;;  %v81_v6 = vld [vmem:[%s3535_s1] sm:$0xff]  ;;  %v75_v10 = vld [vmem:[%s3534_s0 + $0x10] sm:$0xff] }
  0x27   :  { %2530 = vmatpush3.msra.mxu1 %v233_v1  ;;  %2511 = vmatprep.subr.mxu0 %v83_v2  ;;  %v230_v7 = vld [vmem:[%s3538_s4] sm:$0xff]  ;;  %v74_v9 = vld [vmem:[%s3534_s0 + $0x8] sm:$0xff]  ;;  %v3070_v11 = vld [vmem:[#allocation6 + $0x18] sm:$0xff] }
  0x28   :  { %2531 = vmatprep.subr.mxu1 %v232_v3  ;;  %2512 = vmatpush3.msra.mxu0 %v83_v2  ;;  %v73_v8 = vld [vmem:[%s3534_s0] sm:$0xff]  ;;  %v76_v13 = vld [vmem:[%s3534_s0 + $0x18] sm:$0xff]  ;;  %v3081_v14 = vld [vmem:[#allocation6 + $0x10] sm:$0xff] }
  0x29   :  { %2532 = vmatpush3.msra.mxu1 %v232_v3  ;;  %2513 = vmatprep.subr.mxu0 %v82_v4  ;;  %v77_v15 = vld [vmem:[%s3534_s0 + $0x20] sm:$0xff]  ;;  %v3093_v16 = vld [vmem:[%s3536_s2 + $0x18] sm:$0xff]  ;;  %v3095_v17 = vld [vmem:[#allocation6 + $0x8] sm:$0xff] }
  0x2a   :  { %2533 = vmatprep.subr.mxu1 %v231_v5  ;;  %2514 = vmatpush3.msra.mxu0 %v82_v4  ;;  %v78_v18 = vld [vmem:[%s3534_s0 + $0x28] sm:$0xff]  ;;  %v79_v19 = vld [vmem:[%s3534_s0 + $0x30] sm:$0xff]  ;;  %v80_v21 = vld [vmem:[%s3534_s0 + $0x38] sm:$0xff] }
  0x2b   :  { %2534 = vmatpush3.msra.mxu1 %v231_v5  ;;  %2515 = vmatprep.subr.mxu0 %v81_v6  ;;  %v3112_v20 = vld [vmem:[%s3536_s2 + $0x10] sm:$0xff]  ;;  %v3126_v22 = vld [vmem:[%s3536_s2 + $0x8] sm:$0xff]  ;;  %v3128_v23 = vld [vmem:[#allocation6] sm:$0xff] }
  0x2c   :  { %2535 = vmatprep.subr.mxu1 %v230_v7  ;;  %2516 = vmatpush3.msra.mxu0 %v81_v6  ;;  %v3137_v24 = vld [vmem:[%s3536_s2] sm:$0xff] }
  0x2d   :  { %2517 = vmatprep.mubr.msk.f32.mxu0 %vm92_vm0, %v73_v8  ;;  %2536 = vmatpush3.msra.mxu1 %v230_v7  ;;  %v2317_v25 = vld [vmem:[%s3537_s3] ss:$0 sm:$0xff]  ;;  %s2974_s3 = smov 64  }
  0x2e   :  { %2537 = vmatprep.mubr.msk.f32.mxu1 %vm92_vm0, %v73_v8  ;;  %2518 = vmatmul.mubr.msk.f32.vlgmr.msra.gmra.mxu0 %vm92_vm0, %v74_v9  ;;  %v2326_v26 = vld [vmem:[%s3540_s6] ss:$0 sm:$0xff]  ;;  %s2975_s6 = smov 32  }
  0x2f   :  { %2538 = vmatmul.mubr.msk.f32.vlgmr.msra.gmra.mxu1 %vm92_vm0, %v74_v9  ;;  %2560 = vmatprep.subr.mxu1 %v2972_v12 }
  0x30   :  { %2520 = vmatprep.mubr.msk.f32.mxu0 %vm92_vm0, %v75_v10  ;;  %2561 = vmatpush3.msra.mxu1 %v3070_v11 }
  0x31   :  { %2540 = vmatprep.mubr.msk.f32.mxu1 %vm92_vm0, %v75_v10  ;;  %2562 = vmatprep.subr.mxu1 %v2972_v12 }
  0x32   :  { %2549 = vmatprep.subr.mxu0 %v2972_v12  ;;  %2521 = vmatmul.mubr.msk.f32.gmra.mxu0 %vm92_vm0, %v76_v13 }
  0x33   :  { %2541 = vmatmul.mubr.msk.f32.gmra.mxu1 %vm92_vm0, %v76_v13  ;;  %2523 = vmatprep.mubr.msk.f32.mxu0 %vm92_vm0, %v77_v15 }
  0x34   :  { %2563 = vmatpush3.msra.mxu1 %v3081_v14  ;;  %2543 = vmatprep.mubr.msk.f32.mxu1 %vm92_vm0, %v77_v15 }
  0x35   :  { %2564 = vmatprep.subr.mxu1 %v2972_v12  ;;  %2550 = vmatpush3.msra.mxu0 %v3093_v16 }
  0x36   :  { %2565 = vmatpush3.msra.mxu1 %v3095_v17  ;;  %2524 = vmatmul.mubr.msk.f32.gmra.mxu0 %vm92_vm0, %v78_v18 }
  0x37   :  { %2544 = vmatmul.mubr.msk.f32.gmra.mxu1 %vm92_vm0, %v78_v18  ;;  %2551 = vmatprep.subr.mxu0 %v2972_v12 }
  0x38   :  { %2526 = vmatprep.mubr.msk.f32.mxu0 %vm92_vm0, %v79_v19  ;;  %2546 = vmatprep.mubr.msk.f32.mxu1 %vm92_vm0, %v79_v19 }
  0x39   :  { %2552 = vmatpush3.msra.mxu0 %v3112_v20  ;;  %2566 = vmatprep.subr.mxu1 %v2972_v12 }
  0x3a   :  { %2553 = vmatprep.subr.mxu0 %v2972_v12  ;;  %2527 = vmatmul.mubr.msk.f32.gmra.mxu0 %vm92_vm0, %v80_v21 }
  0x3b   :  { %2547 = vmatmul.mubr.msk.f32.gmra.mxu1 %vm92_vm0, %v80_v21  ;;  %2554 = vmatpush3.msra.mxu0 %v3126_v22 }
  0x3c   :  { %2567 = vmatpush3.msra.mxu1 %v3128_v23  ;;  %2555 = vmatprep.subr.mxu0 %v2972_v12 }
  0x3d   :  { %2557 = vmatprep.mubr.msk.f32.mxu0 %vm2973_vm1, %v2972_v12  ;;  %2556 = vmatpush3.msra.mxu0 %v3137_v24 }
  0x3e   :  { %2568 = vmatprep.mubr.msk.f32.mxu1 %vm2973_vm1, %v2972_v12  ;;  %2558 = vmatmul.mubr.f32.vlgmr.msra.gmra.mxu0 %v2972_v12 }
  0x3f   :  { %2569 = vmatmul.mubr.f32.vlgmr.msra.gmra.mxu1 %v2972_v12  ;;  %2582 = vmatprep.subr.mxu1 %v2972_v12 }
  0x40   :  { %2571 = vmatprep.subr.mxu0 %v2972_v12  ;;  %2583 = vmatpush3.msra.mxu1 %v3070_v11 }
  0x41   :  { %2572 = vmatpush3.msra.mxu0 %v3093_v16  ;;  %2584 = vmatprep.subr.mxu1 %v2972_v12 }
  0x42   :  { %2573 = vmatprep.subr.mxu0 %v2972_v12  ;;  %2585 = vmatpush3.msra.mxu1 %v3081_v14 }
  0x43   :  { %2574 = vmatpush3.msra.mxu0 %v3112_v20  ;;  %2586 = vmatprep.subr.mxu1 %v2972_v12 }
  0x44   :  { %2590 = vmatprep.mubr.msk.f32.mxu1 %vm2973_vm1, %v2972_v12  ;;  %2587 = vmatpush3.msra.mxu1 %v3095_v17 }
  0x45   :  { %2575 = vmatprep.subr.mxu0 %v2972_v12  ;;  %2588 = vmatprep.subr.mxu1 %v2972_v12 }
  0x46   :  { %2576 = vmatpush3.msra.mxu0 %v3126_v22  ;;  %2589 = vmatpush3.msra.mxu1 %v3128_v23 }
  0x47   :  { %2577 = vmatprep.subr.mxu0 %v2972_v12  ;;  %2579 = vmatprep.mubr.msk.f32.mxu0 %vm2973_vm1, %v2972_v12 }
  0x48   :  { %2578 = vmatpush3.msra.mxu0 %v3137_v24  ;;  %2604 = vmatprep.subr.mxu1 %v2972_v12 }
  0x49   :  { %2593 = vmatprep.subr.mxu0 %v2972_v12 }
  0xee   :  { %v2519_v27 = vpop.f32.mrf.mxu0 }
  0xef   :  { %v2539_v28 = vpop.f32.mrf.mxu1  ;;  %v3177_v29 = vadd.f32 %v2519_v27, %v2317_v25 }
  0xf0   :  { %v3179_v30 = vadd.f32 %v2539_v28, %v2326_v26  ;;  %v183_v31 = vpop.f32.mrf.mxu0 }
  0xf1   :  { %v307_v32 = vpop.f32.mrf.mxu1  ;;  %v184_v58 = vadd.f32 %v2317_v25, %v183_v31 }
  0xf2   :  { %v3181_v33 = vadd.f32 %v2326_v26, %v307_v32  ;;  %v2522_v34 = vpop.f32.mrf.mxu0 }
  0xf3   :  { %v2542_v35 = vpop.f32.mrf.mxu1  ;;  %v3183_v36 = vadd.f32 %v2522_v34, %v2317_v25 }
  0xf4   :  { %v3185_v37 = vadd.f32 %v2542_v35, %v2326_v26  ;;  %v193_v38 = vpop.f32.mrf.mxu0 }
  0xf5   :  { %v317_v39 = vpop.f32.mrf.mxu1  ;;  %v3187_v40 = vadd.f32 %v2317_v25, %v193_v38 }
  0xf6   :  { %v3189_v41 = vadd.f32 %v2326_v26, %v317_v39  ;;  %v2525_v42 = vpop.f32.mrf.mxu0 }
  0xf7   :  { %v2545_v43 = vpop.f32.mrf.mxu1  ;;  %v3191_v44 = vadd.f32 %v2525_v42, %v2317_v25 }
  0xf8   :  { %v3193_v45 = vadd.f32 %v2545_v43, %v2326_v26  ;;  %v203_v46 = vpop.f32.mrf.mxu0 }
  0xf9   :  { %v327_v47 = vpop.f32.mrf.mxu1  ;;  %v3195_v48 = vadd.f32 %v2317_v25, %v203_v46 }
  0xfa   :  { %v3197_v49 = vadd.f32 %v2326_v26, %v327_v47  ;;  %v2528_v50 = vpop.f32.mrf.mxu0 }
  0xfb   :  { %v2548_v51 = vpop.f32.mrf.mxu1  ;;  %v3199_v52 = vadd.f32 %v2528_v50, %v2317_v25 }
  0xfc   :  { %v213_v53 = vpop.f32.mrf.mxu0  ;;  %v343_v55 = vadd.f32 %v2548_v51, %v2326_v26 }
  0xfd   :  { %v337_v54 = vpop.f32.mrf.mxu1  ;;  %v3201_v56 = vadd.f32 %v2317_v25, %v213_v53 }
  0xfe   :  { %v3203_v57 = vadd.f32 %v2326_v26, %v337_v54  ;;  %v432_v59 = vpop.f32.mrf.mxu0 }
  0xff   :  { %v533_v60 = vpop.f32.mrf.mxu1  ;;  %v433_v0 = vadd.f32 %v432_v59, %v184_v58 }
 0x100   :  { %v534_v61 = vadd.f32 %v533_v60, %v343_v55  ;;  %v2559_v63 = vpop.f32.mrf.mxu0 }
 0x101   :  { %v2570_v62 = vpop.f32.mrf.mxu1  ;;  %v2335_v4 = vmul.f32 -1.442695, %v433_v0 }
 0x102   :  { %2774 = vtanh.f32 %v534_v61  ;;  %v2336_v3 = vmul.f32 -1.442695, %v534_v61 }
 0x103   :  { %2776 = vtanh.f32 %v433_v0 }
 0x104   :  { %2778 = vpow2.f32 %v2336_v3 }
 0x105   :  { %2780 = vpow2.f32 %v2335_v4 }
 0x10f   :  { %v2775_v1 = vpop.eup %2774 }
 0x110   :  { %546 = vrot.lane.b32.xlu0 %v2775_v1, %s2974_s3  ;;  %v2777_v2 = vpop.eup %2776 }
 0x111   :  { %v2779_v5 = vpop.eup %2778 }
 0x112   :  { %v540_v6 = vadd.f32 1.0, %v2779_v5  ;;  %v2781_v7 = vpop.eup %2780 }
 0x113   :  { %v439_v8 = vadd.f32 1.0, %v2781_v7 }
 0x114   :  { %445 = vrot.lane.b32.xlu0 %v2777_v2, %s2974_s3  ;;  %2782 = vrcp.f32 %v540_v6 }
 0x115   :  { %2784 = vrcp.f32 %v439_v8 }
 0x121   :  { %v2783_v9 = vpop.eup %2782 }
 0x122   :  { %v2785_v15 = vpop.eup %2784  ;;  %v544_v21 = vmul.f32 0.0, %v2783_v9 }
 0x123   :  { %v443_v27 = vmul.f32 0.0, %v2785_v15 }
 0x182   :  { %v547_v10 = vpop.permute.xlu0 %546 }
 0x183   :  { %v549_v13 = vmul.f32 %v2783_v9, %v547_v10 }
 0x185   :  { %551 = vrot.lane.b32.xlu1 %v549_v13, %s2975_s6 }
 0x186   :  { %v446_v18 = vpop.permute.xlu0 %445 }
 0x187   :  { %v448_v19 = vmul.f32 %v2785_v15, %v446_v18 }
 0x189   :  { %450 = vrot.lane.b32.xlu1 %v448_v19, %s2975_s6 }
 0x1f7   :  { %v552_v25 = vpop.permute.xlu1 %551 }
 0x1f8   :  { %v3209_v26 = vadd.f32 %v552_v25, %v544_v21 }
 0x1fa   :  { %2786 = vtanh.f32 %v3209_v26 }
 0x1fb   :  { %v451_v28 = vpop.permute.xlu1 %450 }
 0x1fc   :  { %v3212_v31 = vadd.f32 %v451_v28, %v443_v27 }
 0x1fe   :  { %2788 = vtanh.f32 %v3212_v31 }
 0x207   :  { %v2787_v32 = vpop.eup %2786 }
 0x208   :  { %557 = vrot.lane.b32.xlu0 %v2787_v32, %s2974_s3 }
 0x20b   :  { %v2789_v34 = vpop.eup %2788 }
 0x20c   :  { %456 = vrot.lane.b32.xlu1 %v2789_v34, %s2974_s3 }
 0x27a   :  { %v558_v35 = vpop.permute.xlu0 %557 }
 0x27b   :  { %v560_v38 = vmul.f32 %v2783_v9, %v558_v35 }
 0x27d   :  { %562 = vrot.lane.b32.xlu0 %v560_v38, %s2975_s6 }
 0x27e   :  { %v457_v39 = vpop.permute.xlu1 %456 }
 0x27f   :  { %v459_v42 = vmul.f32 %v2785_v15, %v457_v39 }
 0x281   :  { %461 = vrot.lane.b32.xlu1 %v459_v42, %s2975_s6 }
 0x2ef   :  { %v563_v43 = vpop.permute.xlu0 %562 }
 0x2f0   :  { %566 = vst.msk [vmem:[#allocation5 + $0x38] sm:$0xff] %vm92_vm0, %v563_v43  ;;  %2591 = vmatmul.mubr.msk.f32.vlgmr.msra.gmra.mxu1 %vm92_vm0, %v563_v43 }
 0x2f1   :  { %2605 = vmatpush3.msra.mxu1 %v3070_v11  ;;  %2612 = vmatprep.mubr.msk.f32.mxu1 %vm2973_vm1, %v2972_v12 }
 0x2f2   :  { %2606 = vmatprep.subr.mxu1 %v2972_v12 }
 0x2f3   :  { %v462_v46 = vpop.permute.xlu1 %461  ;;  %2607 = vmatpush3.msra.mxu1 %v3081_v14 }
 0x2f4   :  { %464 = vst.msk [vmem:[#allocation4] sm:$0xff] %vm92_vm0, %v462_v46  ;;  %2580 = vmatmul.mubr.msk.f32.vlgmr.msra.gmra.mxu0 %vm92_vm0, %v462_v46  ;;  %2608 = vmatprep.subr.mxu1 %v2972_v12 }
 0x2f5   :  { %2594 = vmatpush3.msra.mxu0 %v3093_v16  ;;  %2609 = vmatpush3.msra.mxu1 %v3095_v17 }
 0x2f6   :  { %2595 = vmatprep.subr.mxu0 %v2972_v12  ;;  %2610 = vmatprep.subr.mxu1 %v2972_v12 }
 0x2f7   :  { %2611 = vmatpush3.msra.mxu1 %v3128_v23  ;;  %2596 = vmatpush3.msra.mxu0 %v3112_v20 }
 0x2f8   :  { %2597 = vmatprep.subr.mxu0 %v2972_v12  ;;  %2601 = vmatprep.mubr.msk.f32.mxu0 %vm2973_vm1, %v2972_v12 }
 0x2f9   :  { %2598 = vmatpush3.msra.mxu0 %v3126_v22  ;;  %2626 = vmatprep.subr.mxu1 %v2972_v12 }
 0x2fa   :  { %2599 = vmatprep.subr.mxu0 %v2972_v12 }
 0x2fb   :  { %2600 = vmatpush3.msra.mxu0 %v3137_v24 }
 0x2fc   :  { %2615 = vmatprep.subr.mxu0 %v2972_v12 }
 0x3b0   :  { %v741_v47 = vpop.f32.mrf.mxu1 }
 0x3b1   :  { %v742_v50 = vadd.f32 %v741_v47, %v3203_v57 }
 0x3b2   :  { %v2592_v51 = vpop.f32.mrf.mxu1 }
 0x3b3   :  { %2790 = vtanh.f32 %v742_v50  ;;  %v2340_v60 = vmul.f32 -1.442695, %v742_v50 }
 0x3b4   :  { %v637_v53 = vpop.f32.mrf.mxu0 }
 0x3b5   :  { %v638_v54 = vadd.f32 %v637_v53, %v3177_v29 }
 0x3b6   :  { %v2581_v55 = vpop.f32.mrf.mxu0 }
 0x3b7   :  { %2792 = vtanh.f32 %v638_v54  ;;  %v2338_v61 = vmul.f32 -1.442695, %v638_v54 }
 0x3b8   :  { %2794 = vpow2.f32 %v2340_v60 }
 0x3b9   :  { %2796 = vpow2.f32 %v2338_v61 }
 0x3c0   :  { %v2791_v58 = vpop.eup %2790 }
 0x3c1   :  { %754 = vrot.lane.b32.xlu0 %v2791_v58, %s2974_s3 }
 0x3c4   :  { %v2793_v59 = vpop.eup %2792 }
 0x3c5   :  { %650 = vrot.lane.b32.xlu1 %v2793_v59, %s2974_s3  ;;  %v2795_v62 = vpop.eup %2794 }
 0x3c6   :  { %v748_v63 = vadd.f32 1.0, %v2795_v62  ;;  %v2797_v57 = vpop.eup %2796 }
 0x3c7   :  { %v644_v0 = vadd.f32 1.0, %v2797_v57 }
 0x3c8   :  { %2798 = vrcp.f32 %v748_v63 }
 0x3c9   :  { %2800 = vrcp.f32 %v644_v0 }
 0x3d5   :  { %v2799_v1 = vpop.eup %2798 }
 0x3d6   :  { %v2801_v3 = vpop.eup %2800  ;;  %v752_v6 = vmul.f32 %v2799_v1, %v3209_v26 }
 0x3d7   :  { %v648_v9 = vmul.f32 %v2801_v3, %v3212_v31 }
 0x433   :  { %v755_v29 = vpop.permute.xlu0 %754 }
 0x434   :  { %v757_v2 = vmul.f32 %v2799_v1, %v755_v29 }
 0x436   :  { %759 = vrot.lane.b32.xlu0 %v757_v2, %s2975_s6 }
 0x437   :  { %v651_v4 = vpop.permute.xlu1 %650 }
 0x438   :  { %v653_v5 = vmul.f32 %v2801_v3, %v651_v4 }
 0x43a   :  { %655 = vrot.lane.b32.xlu1 %v653_v5, %s2975_s6 }
 0x4a8   :  { %v760_v7 = vpop.permute.xlu0 %759 }
 0x4a9   :  { %v3250_v8 = vadd.f32 %v760_v7, %v752_v6 }
 0x4ab   :  { %2802 = vtanh.f32 %v3250_v8 }
 0x4ac   :  { %v656_v10 = vpop.permute.xlu1 %655 }
 0x4ad   :  { %v3254_v13 = vadd.f32 %v656_v10, %v648_v9 }
 0x4af   :  { %2804 = vtanh.f32 %v3254_v13 }
 0x4b8   :  { %v2803_v15 = vpop.eup %2802 }
 0x4b9   :  { %765 = vrot.lane.b32.xlu0 %v2803_v15, %s2974_s3 }
 0x4bc   :  { %v2805_v18 = vpop.eup %2804 }
 0x4bd   :  { %661 = vrot.lane.b32.xlu1 %v2805_v18, %s2974_s3 }
 0x52b   :  { %v766_v19 = vpop.permute.xlu0 %765 }
 0x52c   :  { %v768_v21 = vmul.f32 %v2799_v1, %v766_v19 }
 0x52e   :  { %770 = vrot.lane.b32.xlu0 %v768_v21, %s2975_s6 }
 0x52f   :  { %v662_v25 = vpop.permute.xlu1 %661 }
 0x530   :  { %v664_v26 = vmul.f32 %v2801_v3, %v662_v25 }
 0x532   :  { %666 = vrot.lane.b32.xlu1 %v664_v26, %s2975_s6 }
 0x5a0   :  { %v771_v27 = vpop.permute.xlu0 %770 }
 0x5a1   :  { %774 = vst.msk [vmem:[#allocation5 + $0x30] sm:$0xff] %vm92_vm0, %v771_v27  ;;  %2613 = vmatmul.mubr.msk.f32.vlgmr.msra.gmra.mxu1 %vm92_vm0, %v771_v27 }
 0x5a2   :  { %2627 = vmatpush3.msra.mxu1 %v3070_v11  ;;  %2634 = vmatprep.mubr.msk.f32.mxu1 %vm2973_vm1, %v2972_v12 }
 0x5a3   :  { %2628 = vmatprep.subr.mxu1 %v2972_v12 }
 0x5a4   :  { %v667_v28 = vpop.permute.xlu1 %666  ;;  %2629 = vmatpush3.msra.mxu1 %v3081_v14 }
 0x5a5   :  { %670 = vst.msk [vmem:[#allocation4 + $0x8] sm:$0xff] %vm92_vm0, %v667_v28  ;;  %2602 = vmatmul.mubr.msk.f32.vlgmr.msra.gmra.mxu0 %vm92_vm0, %v667_v28  ;;  %2630 = vmatprep.subr.mxu1 %v2972_v12 }
 0x5a6   :  { %2616 = vmatpush3.msra.mxu0 %v3093_v16  ;;  %2631 = vmatpush3.msra.mxu1 %v3095_v17 }
 0x5a7   :  { %2617 = vmatprep.subr.mxu0 %v2972_v12  ;;  %2632 = vmatprep.subr.mxu1 %v2972_v12 }
 0x5a8   :  { %2633 = vmatpush3.msra.mxu1 %v3128_v23  ;;  %2618 = vmatpush3.msra.mxu0 %v3112_v20 }
 0x5a9   :  { %2619 = vmatprep.subr.mxu0 %v2972_v12  ;;  %2623 = vmatprep.mubr.msk.f32.mxu0 %vm2973_vm1, %v2972_v12 }
 0x5aa   :  { %2620 = vmatpush3.msra.mxu0 %v3126_v22  ;;  %2648 = vmatprep.subr.mxu1 %v2972_v12 }
 0x5ab   :  { %2621 = vmatprep.subr.mxu0 %v2972_v12 }
 0x5ac   :  { %2622 = vmatpush3.msra.mxu0 %v3137_v24 }
 0x5ad   :  { %2637 = vmatprep.subr.mxu0 %v2972_v12 }
 0x661   :  { %v949_v31 = vpop.f32.mrf.mxu1 }
 0x662   :  { %v950_v32 = vadd.f32 %v949_v31, %v3193_v45 }
 0x663   :  { %v2614_v34 = vpop.f32.mrf.mxu1 }
 0x664   :  { %2806 = vtanh.f32 %v950_v32  ;;  %v2344_v46 = vmul.f32 -1.442695, %v950_v32 }
 0x665   :  { %v845_v35 = vpop.f32.mrf.mxu0 }
 0x666   :  { %v846_v38 = vadd.f32 %v845_v35, %v3187_v40 }
 0x667   :  { %v2603_v39 = vpop.f32.mrf.mxu0 }
 0x668   :  { %2808 = vtanh.f32 %v846_v38  ;;  %v2342_v47 = vmul.f32 -1.442695, %v846_v38 }
 0x669   :  { %2810 = vpow2.f32 %v2344_v46 }
 0x66a   :  { %2812 = vpow2.f32 %v2342_v47 }
 0x671   :  { %v2807_v42 = vpop.eup %2806 }
 0x672   :  { %962 = vrot.lane.b32.xlu0 %v2807_v42, %s2974_s3 }
 0x675   :  { %v2809_v43 = vpop.eup %2808 }
 0x676   :  { %858 = vrot.lane.b32.xlu1 %v2809_v43, %s2974_s3  ;;  %v2811_v50 = vpop.eup %2810 }
 0x677   :  { %v956_v51 = vadd.f32 1.0, %v2811_v50  ;;  %v2813_v45 = vpop.eup %2812 }
 0x678   :  { %v852_v53 = vadd.f32 1.0, %v2813_v45 }
 0x679   :  { %2814 = vrcp.f32 %v956_v51 }
 0x67a   :  { %2816 = vrcp.f32 %v852_v53 }
 0x686   :  { %v2815_v54 = vpop.eup %2814 }
 0x687   :  { %v2817_v58 = vpop.eup %2816  ;;  %v960_v61 = vmul.f32 %v2815_v54, %v3250_v8 }
 0x688   :  { %v856_v57 = vmul.f32 %v2817_v58, %v3254_v13 }
 0x6e4   :  { %v963_v40 = vpop.permute.xlu0 %962 }
 0x6e5   :  { %v965_v55 = vmul.f32 %v2815_v54, %v963_v40 }
 0x6e7   :  { %967 = vrot.lane.b32.xlu0 %v965_v55, %s2975_s6 }
 0x6e8   :  { %v859_v59 = vpop.permute.xlu1 %858 }
 0x6e9   :  { %v861_v60 = vmul.f32 %v2817_v58, %v859_v59 }
 0x6eb   :  { %863 = vrot.lane.b32.xlu1 %v861_v60, %s2975_s6 }
 0x759   :  { %v968_v62 = vpop.permute.xlu0 %967 }
 0x75a   :  { %v3292_v63 = vadd.f32 %v968_v62, %v960_v61 }
 0x75c   :  { %2818 = vtanh.f32 %v3292_v63 }
 0x75d   :  { %v864_v0 = vpop.permute.xlu1 %863 }
 0x75e   :  { %v3296_v1 = vadd.f32 %v864_v0, %v856_v57 }
 0x760   :  { %2820 = vtanh.f32 %v3296_v1 }
 0x769   :  { %v2819_v29 = vpop.eup %2818 }
 0x76a   :  { %973 = vrot.lane.b32.xlu0 %v2819_v29, %s2974_s3 }
 0x76d   :  { %v2821_v2 = vpop.eup %2820 }
 0x76e   :  { %869 = vrot.lane.b32.xlu1 %v2821_v2, %s2974_s3 }
 0x7dc   :  { %v974_v3 = vpop.permute.xlu0 %973 }
 0x7dd   :  { %v976_v4 = vmul.f32 %v2815_v54, %v974_v3 }
 0x7df   :  { %978 = vrot.lane.b32.xlu0 %v976_v4, %s2975_s6 }
 0x7e0   :  { %v870_v5 = vpop.permute.xlu1 %869 }
 0x7e1   :  { %v872_v6 = vmul.f32 %v2817_v58, %v870_v5 }
 0x7e3   :  { %874 = vrot.lane.b32.xlu1 %v872_v6, %s2975_s6 }
 0x851   :  { %v979_v7 = vpop.permute.xlu0 %978 }
 0x852   :  { %982 = vst.msk [vmem:[#allocation5 + $0x28] sm:$0xff] %vm92_vm0, %v979_v7  ;;  %2635 = vmatmul.mubr.msk.f32.vlgmr.msra.gmra.mxu1 %vm92_vm0, %v979_v7 }
 0x853   :  { %2649 = vmatpush3.msra.mxu1 %v3070_v11  ;;  %2656 = vmatprep.mubr.msk.f32.mxu1 %vm2973_vm1, %v2972_v12 }
 0x854   :  { %2650 = vmatprep.subr.mxu1 %v2972_v12 }
 0x855   :  { %v875_v8 = vpop.permute.xlu1 %874  ;;  %2651 = vmatpush3.msra.mxu1 %v3081_v14 }
 0x856   :  { %878 = vst.msk [vmem:[#allocation4 + $0x10] sm:$0xff] %vm92_vm0, %v875_v8  ;;  %2624 = vmatmul.mubr.msk.f32.vlgmr.msra.gmra.mxu0 %vm92_vm0, %v875_v8  ;;  %2652 = vmatprep.subr.mxu1 %v2972_v12 }
 0x857   :  { %2638 = vmatpush3.msra.mxu0 %v3093_v16  ;;  %2653 = vmatpush3.msra.mxu1 %v3095_v17 }
 0x858   :  { %2639 = vmatprep.subr.mxu0 %v2972_v12  ;;  %2654 = vmatprep.subr.mxu1 %v2972_v12 }
 0x859   :  { %2655 = vmatpush3.msra.mxu1 %v3128_v23  ;;  %2640 = vmatpush3.msra.mxu0 %v3112_v20 }
 0x85a   :  { %2641 = vmatprep.subr.mxu0 %v2972_v12  ;;  %2645 = vmatprep.mubr.msk.f32.mxu0 %vm2973_vm1, %v2972_v12 }
 0x85b   :  { %2642 = vmatpush3.msra.mxu0 %v3126_v22  ;;  %2670 = vmatprep.subr.mxu1 %v2972_v12 }
 0x85c   :  { %2643 = vmatprep.subr.mxu0 %v2972_v12 }
 0x85d   :  { %2644 = vmatpush3.msra.mxu0 %v3137_v24 }
 0x85e   :  { %2659 = vmatprep.subr.mxu0 %v2972_v12 }
 0x912   :  { %v1157_v9 = vpop.f32.mrf.mxu1 }
 0x913   :  { %v1158_v10 = vadd.f32 %v1157_v9, %v3197_v49 }
 0x914   :  { %v2636_v13 = vpop.f32.mrf.mxu1 }
 0x915   :  { %2822 = vtanh.f32 %v1158_v10  ;;  %v2348_v26 = vmul.f32 -1.442695, %v1158_v10 }
 0x916   :  { %v1053_v15 = vpop.f32.mrf.mxu0 }
 0x917   :  { %v1054_v18 = vadd.f32 %v1053_v15, %v3183_v36 }
 0x918   :  { %v2625_v19 = vpop.f32.mrf.mxu0 }
 0x919   :  { %2824 = vtanh.f32 %v1054_v18  ;;  %v2346_v27 = vmul.f32 -1.442695, %v1054_v18 }
 0x91a   :  { %2826 = vpow2.f32 %v2348_v26 }
 0x91b   :  { %2828 = vpow2.f32 %v2346_v27 }
 0x922   :  { %v2823_v21 = vpop.eup %2822 }
 0x923   :  { %1170 = vrot.lane.b32.xlu0 %v2823_v21, %s2974_s3 }
 0x926   :  { %v2825_v25 = vpop.eup %2824 }
 0x927   :  { %1066 = vrot.lane.b32.xlu1 %v2825_v25, %s2974_s3  ;;  %v2827_v28 = vpop.eup %2826 }
 0x928   :  { %v1164_v31 = vadd.f32 1.0, %v2827_v28  ;;  %v2829_v49 = vpop.eup %2828 }
 0x929   :  { %v1060_v32 = vadd.f32 1.0, %v2829_v49 }
 0x92a   :  { %2830 = vrcp.f32 %v1164_v31 }
 0x92b   :  { %2832 = vrcp.f32 %v1060_v32 }
 0x937   :  { %v2831_v34 = vpop.eup %2830 }
 0x938   :  { %v2833_v38 = vpop.eup %2832  ;;  %v1168_v43 = vmul.f32 %v2831_v34, %v3292_v63 }
 0x939   :  { %v1064_v50 = vmul.f32 %v2833_v38, %v3296_v1 }
 0x995   :  { %v1171_v36 = vpop.permute.xlu0 %1170 }
 0x996   :  { %v1173_v35 = vmul.f32 %v2831_v34, %v1171_v36 }
 0x998   :  { %1175 = vrot.lane.b32.xlu0 %v1173_v35, %s2975_s6 }
 0x999   :  { %v1067_v39 = vpop.permute.xlu1 %1066 }
 0x99a   :  { %v1069_v42 = vmul.f32 %v2833_v38, %v1067_v39 }
 0x99c   :  { %1071 = vrot.lane.b32.xlu1 %v1069_v42, %s2975_s6 }
 0xa0a   :  { %v1176_v46 = vpop.permute.xlu0 %1175 }
 0xa0b   :  { %v3334_v47 = vadd.f32 %v1176_v46, %v1168_v43 }
 0xa0d   :  { %2834 = vtanh.f32 %v3334_v47 }
 0xa0e   :  { %v1072_v51 = vpop.permute.xlu1 %1071 }
 0xa0f   :  { %v3338_v45 = vadd.f32 %v1072_v51, %v1064_v50 }
 0xa11   :  { %2836 = vtanh.f32 %v3338_v45 }
 0xa1a   :  { %v2835_v53 = vpop.eup %2834 }
 0xa1b   :  { %1181 = vrot.lane.b32.xlu0 %v2835_v53, %s2974_s3 }
 0xa1e   :  { %v2837_v54 = vpop.eup %2836 }
 0xa1f   :  { %1077 = vrot.lane.b32.xlu1 %v2837_v54, %s2974_s3 }
 0xa8d   :  { %v1182_v40 = vpop.permute.xlu0 %1181 }
 0xa8e   :  { %v1184_v55 = vmul.f32 %v2831_v34, %v1182_v40 }
 0xa90   :  { %1186 = vrot.lane.b32.xlu0 %v1184_v55, %s2975_s6 }
 0xa91   :  { %v1078_v58 = vpop.permute.xlu1 %1077 }
 0xa92   :  { %v1080_v59 = vmul.f32 %v2833_v38, %v1078_v58 }
 0xa94   :  { %1082 = vrot.lane.b32.xlu1 %v1080_v59, %s2975_s6 }
 0xb02   :  { %v1187_v60 = vpop.permute.xlu0 %1186 }
 0xb03   :  { %1190 = vst.msk [vmem:[#allocation5 + $0x20] sm:$0xff] %vm92_vm0, %v1187_v60  ;;  %2657 = vmatmul.mubr.msk.f32.vlgmr.msra.gmra.mxu1 %vm92_vm0, %v1187_v60 }
 0xb04   :  { %2671 = vmatpush3.msra.mxu1 %v3070_v11  ;;  %2678 = vmatprep.mubr.msk.f32.mxu1 %vm2973_vm1, %v2972_v12 }
 0xb05   :  { %2672 = vmatprep.subr.mxu1 %v2972_v12 }
 0xb06   :  { %v1083_v61 = vpop.permute.xlu1 %1082  ;;  %2673 = vmatpush3.msra.mxu1 %v3081_v14 }
 0xb07   :  { %1086 = vst.msk [vmem:[#allocation4 + $0x18] sm:$0xff] %vm92_vm0, %v1083_v61  ;;  %2646 = vmatmul.mubr.msk.f32.vlgmr.msra.gmra.mxu0 %vm92_vm0, %v1083_v61  ;;  %2674 = vmatprep.subr.mxu1 %v2972_v12 }
 0xb08   :  { %2660 = vmatpush3.msra.mxu0 %v3093_v16  ;;  %2675 = vmatpush3.msra.mxu1 %v3095_v17 }
 0xb09   :  { %2661 = vmatprep.subr.mxu0 %v2972_v12  ;;  %2676 = vmatprep.subr.mxu1 %v2972_v12 }
 0xb0a   :  { %2677 = vmatpush3.msra.mxu1 %v3128_v23  ;;  %2662 = vmatpush3.msra.mxu0 %v3112_v20 }
 0xb0b   :  { %2663 = vmatprep.subr.mxu0 %v2972_v12  ;;  %2667 = vmatprep.mubr.msk.f32.mxu0 %vm2973_vm1, %v2972_v12 }
 0xb0c   :  { %2664 = vmatpush3.msra.mxu0 %v3126_v22  ;;  %2692 = vmatprep.subr.mxu1 %v2972_v12 }
 0xb0d   :  { %2665 = vmatprep.subr.mxu0 %v2972_v12 }
 0xb0e   :  { %2666 = vmatpush3.msra.mxu0 %v3137_v24 }
 0xb0f   :  { %2681 = vmatprep.subr.mxu0 %v2972_v12 }
 0xbc3   :  { %v1365_v62 = vpop.f32.mrf.mxu1 }
 0xbc4   :  { %v1366_v63 = vadd.f32 %v1365_v62, %v3185_v37 }
 0xbc5   :  { %v2658_v57 = vpop.f32.mrf.mxu1 }
 0xbc6   :  { %2838 = vtanh.f32 %v1366_v63  ;;  %v2352_v4 = vmul.f32 -1.442695, %v1366_v63 }
 0xbc7   :  { %v1261_v0 = vpop.f32.mrf.mxu0 }
 0xbc8   :  { %v1262_v1 = vadd.f32 %v1261_v0, %v3195_v48 }
 0xbc9   :  { %v2647_v29 = vpop.f32.mrf.mxu0 }
 0xbca   :  { %2840 = vtanh.f32 %v1262_v1  ;;  %v2350_v5 = vmul.f32 -1.442695, %v1262_v1 }
 0xbcb   :  { %2842 = vpow2.f32 %v2352_v4 }
 0xbcc   :  { %2844 = vpow2.f32 %v2350_v5 }
 0xbd3   :  { %v2839_v2 = vpop.eup %2838 }
 0xbd4   :  { %1378 = vrot.lane.b32.xlu0 %v2839_v2, %s2974_s3 }
 0xbd7   :  { %v2841_v3 = vpop.eup %2840 }
 0xbd8   :  { %1274 = vrot.lane.b32.xlu1 %v2841_v3, %s2974_s3  ;;  %v2843_v6 = vpop.eup %2842 }
 0xbd9   :  { %v1372_v7 = vadd.f32 1.0, %v2843_v6  ;;  %v2845_v37 = vpop.eup %2844 }
 0xbda   :  { %v1268_v8 = vadd.f32 1.0, %v2845_v37 }
 0xbdb   :  { %2846 = vrcp.f32 %v1372_v7 }
 0xbdc   :  { %2848 = vrcp.f32 %v1268_v8 }
 0xbe8   :  { %v2847_v9 = vpop.eup %2846 }
 0xbe9   :  { %v2849_v13 = vpop.eup %2848  ;;  %v1376_v19 = vmul.f32 %v2847_v9, %v3334_v47 }
 0xbea   :  { %v1272_v26 = vmul.f32 %v2849_v13, %v3338_v45 }
 0xc46   :  { %v1379_v48 = vpop.permute.xlu0 %1378 }
 0xc47   :  { %v1381_v10 = vmul.f32 %v2847_v9, %v1379_v48  ;;  %v2902_v48 = vld [vmem:[#allocation6 + $0x18] sm:$0xff] }
 0xc49   :  { %1383 = vrot.lane.b32.xlu0 %v1381_v10, %s2975_s6 }
 0xc4a   :  { %v1275_v15 = vpop.permute.xlu1 %1274 }
 0xc4b   :  { %v1277_v18 = vmul.f32 %v2849_v13, %v1275_v15 }
 0xc4d   :  { %1279 = vrot.lane.b32.xlu1 %v1277_v18, %s2975_s6 }
 0xcbb   :  { %v1384_v21 = vpop.permute.xlu0 %1383 }
 0xcbc   :  { %v3376_v25 = vadd.f32 %v1384_v21, %v1376_v19 }
 0xcbe   :  { %2850 = vtanh.f32 %v3376_v25 }
 0xcbf   :  { %v1280_v27 = vpop.permute.xlu1 %1279 }
 0xcc0   :  { %v3380_v28 = vadd.f32 %v1280_v27, %v1272_v26 }
 0xcc2   :  { %2852 = vtanh.f32 %v3380_v28 }
 0xccb   :  { %v2851_v31 = vpop.eup %2850 }
 0xccc   :  { %1389 = vrot.lane.b32.xlu0 %v2851_v31, %s2974_s3 }
 0xccf   :  { %v2853_v49 = vpop.eup %2852 }
 0xcd0   :  { %1285 = vrot.lane.b32.xlu1 %v2853_v49, %s2974_s3 }
 0xd3e   :  { %v1390_v32 = vpop.permute.xlu0 %1389 }
 0xd3f   :  { %v1392_v34 = vmul.f32 %v2847_v9, %v1390_v32 }
 0xd41   :  { %1394 = vrot.lane.b32.xlu0 %v1392_v34, %s2975_s6 }
 0xd42   :  { %v1286_v36 = vpop.permute.xlu1 %1285 }
 0xd43   :  { %v1288_v35 = vmul.f32 %v2849_v13, %v1286_v36 }
 0xd45   :  { %1290 = vrot.lane.b32.xlu1 %v1288_v35, %s2975_s6 }
 0xdb3   :  { %v1395_v38 = vpop.permute.xlu0 %1394 }
 0xdb4   :  { %1398 = vst.msk [vmem:[#allocation5 + $0x18] sm:$0xff] %vm92_vm0, %v1395_v38  ;;  %2679 = vmatmul.mubr.msk.f32.vlgmr.msra.gmra.mxu1 %vm92_vm0, %v1395_v38 }
 0xdb5   :  { %2693 = vmatpush3.msra.mxu1 %v3070_v11  ;;  %2700 = vmatprep.mubr.msk.f32.mxu1 %vm2973_vm1, %v2972_v12 }
 0xdb6   :  { %2694 = vmatprep.subr.mxu1 %v2972_v12 }
 0xdb7   :  { %v1291_v39 = vpop.permute.xlu1 %1290  ;;  %2695 = vmatpush3.msra.mxu1 %v3081_v14 }
 0xdb8   :  { %1294 = vst.msk [vmem:[#allocation4 + $0x20] sm:$0xff] %vm92_vm0, %v1291_v39  ;;  %2668 = vmatmul.mubr.msk.f32.vlgmr.msra.gmra.mxu0 %vm92_vm0, %v1291_v39  ;;  %2696 = vmatprep.subr.mxu1 %v2972_v12  ;;  %v2032_v39 = vld [vmem:[#allocation8 + $0x18] sm:$0xff] }
 0xdb9   :  { %2682 = vmatpush3.msra.mxu0 %v3093_v16  ;;  %2697 = vmatpush3.msra.mxu1 %v3095_v17 }
 0xdba   :  { %2683 = vmatprep.subr.mxu0 %v2972_v12  ;;  %2698 = vmatprep.subr.mxu1 %v2972_v12 }
 0xdbb   :  { %2699 = vmatpush3.msra.mxu1 %v3128_v23  ;;  %2684 = vmatpush3.msra.mxu0 %v3112_v20 }
 0xdbc   :  { %2685 = vmatprep.subr.mxu0 %v2972_v12  ;;  %2689 = vmatprep.mubr.msk.f32.mxu0 %vm2973_vm1, %v2972_v12 }
 0xdbd   :  { %2686 = vmatpush3.msra.mxu0 %v3126_v22  ;;  %2714 = vmatprep.subr.mxu1 %v2972_v12 }
 0xdbe   :  { %2687 = vmatprep.subr.mxu0 %v2972_v12 }
 0xdbf   :  { %2688 = vmatpush3.msra.mxu0 %v3137_v24 }
 0xdc0   :  { %2703 = vmatprep.subr.mxu0 %v2972_v12 }
 0xe74   :  { %v1573_v11 = vpop.f32.mrf.mxu1 }
 0xe75   :  { %v1574_v42 = vadd.f32 %v1573_v11, %v3189_v41 }
 0xe76   :  { %v2680_v43 = vpop.f32.mrf.mxu1 }
 0xe77   :  { %2854 = vtanh.f32 %v1574_v42  ;;  %v2356_v53 = vmul.f32 -1.442695, %v1574_v42 }
 0xe78   :  { %v1469_v46 = vpop.f32.mrf.mxu0 }
 0xe79   :  { %v1470_v47 = vadd.f32 %v1469_v46, %v3191_v44 }
 0xe7a   :  { %v2669_v50 = vpop.f32.mrf.mxu0 }
 0xe7b   :  { %2856 = vtanh.f32 %v1470_v47  ;;  %v2354_v54 = vmul.f32 -1.442695, %v1470_v47 }
 0xe7c   :  { %2858 = vpow2.f32 %v2356_v53  ;;  %v2021_v53 = vld [vmem:[#allocation4] sm:$0xff] }
 0xe7d   :  { %2860 = vpow2.f32 %v2354_v54  ;;  %v2030_v54 = vld [vmem:[#allocation8 + $0x8] sm:$0xff] }
 0xe84   :  { %v2855_v51 = vpop.eup %2854 }
 0xe85   :  { %1586 = vrot.lane.b32.xlu0 %v2855_v51, %s2974_s3 }
 0xe88   :  { %v2857_v45 = vpop.eup %2856 }
 0xe89   :  { %1482 = vrot.lane.b32.xlu1 %v2857_v45, %s2974_s3  ;;  %v2859_v40 = vpop.eup %2858  ;;  %v2031_v45 = vld [vmem:[#allocation8 + $0x10] sm:$0xff] }
 0xe8a   :  { %v1580_v55 = vadd.f32 1.0, %v2859_v40  ;;  %v2861_v41 = vpop.eup %2860 }
 0xe8b   :  { %v1476_v58 = vadd.f32 1.0, %v2861_v41  ;;  %v2022_v41 = vld [vmem:[#allocation4 + $0x8] sm:$0xff] }
 0xe8c   :  { %2862 = vrcp.f32 %v1580_v55  ;;  %v2029_v55 = vld [vmem:[#allocation8] sm:$0xff] }
 0xe8d   :  { %2864 = vrcp.f32 %v1476_v58  ;;  %v2023_v58 = vld [vmem:[#allocation4 + $0x10] sm:$0xff] }
 0xe99   :  { %v2863_v59 = vpop.eup %2862 }
 0xe9a   :  { %v2865_v61 = vpop.eup %2864  ;;  %v1584_v57 = vmul.f32 %v2863_v59, %v3376_v25 }
 0xe9b   :  { %v1480_v29 = vmul.f32 %v2865_v61, %v3380_v28 }
 0xef7   :  { %v1587_v44 = vpop.permute.xlu0 %1586 }
 0xef8   :  { %v1589_v60 = vmul.f32 %v2863_v59, %v1587_v44  ;;  %v2025_v44 = vld [vmem:[#allocation4 + $0x20] sm:$0xff] }
 0xefa   :  { %1591 = vrot.lane.b32.xlu0 %v1589_v60, %s2975_s6 }
 0xefb   :  { %v1483_v62 = vpop.permute.xlu1 %1482 }
 0xefc   :  { %v1485_v63 = vmul.f32 %v2865_v61, %v1483_v62 }
 0xefe   :  { %1487 = vrot.lane.b32.xlu1 %v1485_v63, %s2975_s6 }
 0xf6c   :  { %v1592_v0 = vpop.permute.xlu0 %1591 }
 0xf6d   :  { %v3418_v1 = vadd.f32 %v1592_v0, %v1584_v57 }
 0xf6f   :  { %2866 = vtanh.f32 %v3418_v1 }
 0xf70   :  { %v1488_v2 = vpop.permute.xlu1 %1487 }
 0xf71   :  { %v3422_v3 = vadd.f32 %v1488_v2, %v1480_v29 }
 0xf73   :  { %2868 = vtanh.f32 %v3422_v3 }
 0xf7c   :  { %v2867_v4 = vpop.eup %2866 }
 0xf7d   :  { %1597 = vrot.lane.b32.xlu0 %v2867_v4, %s2974_s3 }
 0xf80   :  { %v2869_v5 = vpop.eup %2868 }
 0xf81   :  { %1493 = vrot.lane.b32.xlu1 %v2869_v5, %s2974_s3 }
 0xfef   :  { %v1598_v6 = vpop.permute.xlu0 %1597 }
 0xff0   :  { %v1600_v7 = vmul.f32 %v2863_v59, %v1598_v6  ;;  %v2024_v59 = vld [vmem:[#allocation4 + $0x18] sm:$0xff] }
 0xff2   :  { %1602 = vrot.lane.b32.xlu0 %v1600_v7, %s2975_s6 }
 0xff3   :  { %v1494_v37 = vpop.permute.xlu1 %1493 }
 0xff4   :  { %v1496_v8 = vmul.f32 %v2865_v61, %v1494_v37 }
 0xff6   :  { %1498 = vrot.lane.b32.xlu1 %v1496_v8, %s2975_s6 }
0x1064   :  { %v1603_v9 = vpop.permute.xlu0 %1602 }
0x1065   :  { %1606 = vst.msk [vmem:[#allocation5 + $0x10] sm:$0xff] %vm92_vm0, %v1603_v9  ;;  %2701 = vmatmul.mubr.msk.f32.vlgmr.msra.gmra.mxu1 %vm92_vm0, %v1603_v9 }
0x1066   :  { %2715 = vmatpush3.msra.mxu1 %v2902_v48  ;;  %2722 = vmatprep.mubr.msk.f32.mxu1 %vm2973_vm1, %v2972_v12 }
0x1067   :  { %2716 = vmatprep.subr.mxu1 %v2972_v12 }
0x1068   :  { %v1499_v10 = vpop.permute.xlu1 %1498  ;;  %2717 = vmatpush3.msra.mxu1 %v3081_v14 }
0x1069   :  { %1502 = vst.msk [vmem:[#allocation4 + $0x28] sm:$0xff] %vm92_vm0, %v1499_v10  ;;  %2690 = vmatmul.mubr.msk.f32.vlgmr.msra.gmra.mxu0 %vm92_vm0, %v1499_v10  ;;  %2718 = vmatprep.subr.mxu1 %v2972_v12 }
0x106a   :  { %2719 = vmatpush3.msra.mxu1 %v3095_v17  ;;  %2704 = vmatpush3.msra.mxu0 %v3093_v16 }
0x106b   :  { %2720 = vmatprep.subr.mxu1 %v2972_v12  ;;  %2705 = vmatprep.subr.mxu0 %v2972_v12 }
0x106c   :  { %2721 = vmatpush3.msra.mxu1 %v3128_v23  ;;  %2706 = vmatpush3.msra.mxu0 %v3112_v20 }
0x106d   :  { %2707 = vmatprep.subr.mxu0 %v2972_v12  ;;  %2711 = vmatprep.mubr.msk.f32.mxu0 %vm2973_vm1, %v2972_v12 }
0x106e   :  { %2708 = vmatpush3.msra.mxu0 %v3126_v22  ;;  %2745 = vmatprep.subr.mxu1 %v2032_v39 }
0x106f   :  { %2709 = vmatprep.subr.mxu0 %v2972_v12 }
0x1070   :  { %2710 = vmatpush3.msra.mxu0 %v3137_v24  ;;  %v2026_v60 = vld [vmem:[#allocation4 + $0x28] sm:$0xff] }
0x1125   :  { %v1781_v14 = vpop.f32.mrf.mxu1 }
0x1126   :  { %v1782_v16 = vadd.f32 %v1781_v14, %v3179_v30 }
0x1127   :  { %v2702_v17 = vpop.f32.mrf.mxu1 }
0x1128   :  { %2870 = vtanh.f32 %v1782_v16  ;;  %v2360_v22 = vmul.f32 -1.442695, %v1782_v16 }
0x1129   :  { %v1677_v13 = vpop.f32.mrf.mxu0 }
0x112a   :  { %v1678_v23 = vadd.f32 %v1677_v13, %v3201_v56 }
0x112b   :  { %v2691_v20 = vpop.f32.mrf.mxu0 }
0x112c   :  { %2872 = vtanh.f32 %v1678_v23  ;;  %v2358_v12 = vmul.f32 -1.442695, %v1678_v23 }
0x112d   :  { %2874 = vpow2.f32 %v2360_v22 }
0x112e   :  { %2876 = vpow2.f32 %v2358_v12  ;;  %v2044_v12 = vld [vmem:[#allocation10 + $0x18] sm:$0xff] }
0x112f   :  { %2725 = vmatprep.subr.mxu0 %v2044_v12 }
0x1135   :  { %v2871_v15 = vpop.eup %2870 }
0x1136   :  { %1794 = vrot.lane.b32.xlu0 %v2871_v15, %s2974_s3 }
0x1139   :  { %v2873_v18 = vpop.eup %2872 }
0x113a   :  { %1690 = vrot.lane.b32.xlu1 %v2873_v18, %s2974_s3  ;;  %v2875_v24 = vpop.eup %2874 }
0x113b   :  { %v1788_v19 = vadd.f32 1.0, %v2875_v24  ;;  %v2877_v30 = vpop.eup %2876  ;;  %v2043_v24 = vld [vmem:[#allocation10 + $0x10] sm:$0xff] }
0x113c   :  { %v1684_v21 = vadd.f32 1.0, %v2877_v30  ;;  %v2041_v30 = vld [vmem:[#allocation10] sm:$0xff] }
0x113d   :  { %2878 = vrcp.f32 %v1788_v19  ;;  %v2042_v19 = vld [vmem:[#allocation10 + $0x8] sm:$0xff] }
0x113e   :  { %2880 = vrcp.f32 %v1684_v21 }
0x114a   :  { %v2879_v25 = vpop.eup %2878 }
0x114b   :  { %v2881_v27 = vpop.eup %2880  ;;  %v1792_v49 = vmul.f32 %v2879_v25, %v3418_v1 }
0x114c   :  { %v1688_v36 = vmul.f32 %v2881_v27, %v3422_v3 }
0x11a8   :  { %v1795_v56 = vpop.permute.xlu0 %1794 }
0x11a9   :  { %v1797_v26 = vmul.f32 %v2879_v25, %v1795_v56 }
0x11ab   :  { %1799 = vrot.lane.b32.xlu0 %v1797_v26, %s2975_s6 }
0x11ac   :  { %v1691_v28 = vpop.permute.xlu1 %1690 }
0x11ad   :  { %v1693_v31 = vmul.f32 %v2881_v27, %v1691_v28 }
0x11af   :  { %1695 = vrot.lane.b32.xlu1 %v1693_v31, %s2975_s6 }
0x121d   :  { %v1800_v32 = vpop.permute.xlu0 %1799 }
0x121e   :  { %v3457_v34 = vadd.f32 %v1800_v32, %v1792_v49  ;;  %v2035_v32 = vld [vmem:[#allocation5 + $0x10] sm:$0xff] }
0x1220   :  { %2882 = vtanh.f32 %v3457_v34 }
0x1221   :  { %v1696_v35 = vpop.permute.xlu1 %1695 }
0x1222   :  { %v3461_v38 = vadd.f32 %v1696_v35, %v1688_v36  ;;  %v2036_v36 = vld [vmem:[#allocation5 + $0x18] sm:$0xff]  ;;  %v2037_v35 = vld [vmem:[#allocation5 + $0x20] sm:$0xff] }
0x1224   :  { %2884 = vtanh.f32 %v3461_v38 }
0x122d   :  { %v2883_v11 = vpop.eup %2882 }
0x122e   :  { %1805 = vrot.lane.b32.xlu0 %v2883_v11, %s2974_s3  ;;  %v2040_v11 = vld [vmem:[#allocation5 + $0x38] sm:$0xff] }
0x1231   :  { %v2885_v42 = vpop.eup %2884 }
0x1232   :  { %1701 = vrot.lane.b32.xlu1 %v2885_v42, %s2974_s3 }
0x12a0   :  { %v1806_v43 = vpop.permute.xlu0 %1805 }
0x12a1   :  { %v1808_v46 = vmul.f32 %v2879_v25, %v1806_v43 }
0x12a3   :  { %1810 = vrot.lane.b32.xlu0 %v1808_v46, %s2975_s6 }
0x12a4   :  { %v1702_v47 = vpop.permute.xlu1 %1701 }
0x12a5   :  { %v1704_v50 = vmul.f32 %v2881_v27, %v1702_v47 }
0x12a7   :  { %1706 = vrot.lane.b32.xlu1 %v1704_v50, %s2975_s6 }
0x1315   :  { %v1811_v51 = vpop.permute.xlu0 %1810 }
0x1316   :  { %1814 = vst.msk [vmem:[#allocation5 + $0x8] sm:$0xff] %vm92_vm0, %v1811_v51  ;;  %2723 = vmatmul.mubr.msk.f32.vlgmr.msra.gmra.mxu1 %vm92_vm0, %v1811_v51 }
0x1317   :  { %2746 = vmatpush3.msra.mxu1 %v2032_v39  ;;  %2753 = vmatprep.mubr.msk.f32.mxu1 %vm92_vm0, %v2021_v53  ;;  %v2039_v39 = vld [vmem:[#allocation5 + $0x30] sm:$0xff] }
0x1318   :  { %2747 = vmatprep.subr.mxu1 %v2031_v45 }
0x1319   :  { %2748 = vmatpush3.msra.mxu1 %v2031_v45  ;;  %v1707_v40 = vpop.permute.xlu1 %1706 }
0x131a   :  { %2749 = vmatprep.subr.mxu1 %v2030_v54  ;;  %1710 = vst.msk [vmem:[#allocation4 + $0x30] sm:$0xff] %vm92_vm0, %v1707_v40  ;;  %2712 = vmatmul.mubr.msk.f32.vlgmr.msra.gmra.mxu0 %vm92_vm0, %v1707_v40 }
0x131b   :  { %2750 = vmatpush3.msra.mxu1 %v2030_v54  ;;  %2726 = vmatpush3.msra.mxu0 %v2044_v12 }
0x131c   :  { %2751 = vmatprep.subr.mxu1 %v2029_v55  ;;  %2727 = vmatprep.subr.mxu0 %v2043_v24 }
0x131d   :  { %2752 = vmatpush3.msra.mxu1 %v2029_v55  ;;  %2728 = vmatpush3.msra.mxu0 %v2043_v24  ;;  %v2034_v49 = vld [vmem:[#allocation5 + $0x8] sm:$0xff] }
0x131e   :  { %2754 = vmatmul.mubr.msk.f32.vlgmr.msra.gmra.mxu1 %vm92_vm0, %v2022_v41  ;;  %2729 = vmatprep.subr.mxu0 %v2042_v19 }
0x131f   :  { %2756 = vmatprep.mubr.msk.f32.mxu1 %vm92_vm0, %v2023_v58  ;;  %2730 = vmatpush3.msra.mxu0 %v2042_v19 }
0x1320   :  { %2731 = vmatprep.subr.mxu0 %v2041_v30 }
0x1321   :  { %v2027_v61 = vld [vmem:[#allocation4 + $0x30] sm:$0xff]  ;;  %2732 = vmatpush3.msra.mxu0 %v2041_v30 }
0x1322   :  { %2757 = vmatmul.mubr.msk.f32.gmra.mxu1 %vm92_vm0, %v2024_v59 }
0x1323   :  { %2759 = vmatprep.mubr.msk.f32.mxu1 %vm92_vm0, %v2025_v44 }
0x1326   :  { %2760 = vmatmul.mubr.msk.f32.gmra.mxu1 %vm92_vm0, %v2026_v60 }
0x1327   :  { %2762 = vmatprep.mubr.msk.f32.mxu1 %vm92_vm0, %v2027_v61 }
0x13d6   :  { %v1988_v62 = vpop.f32.mrf.mxu1 }
0x13d7   :  { %v1989_v63 = vadd.f32 %v1988_v62, %v3181_v33 }
0x13d8   :  { %v2724_v57 = vpop.f32.mrf.mxu1 }
0x13d9   :  { %2886 = vtanh.f32 %v1989_v63  ;;  %v2364_v4 = vmul.f32 -1.442695, %v1989_v63 }
0x13da   :  { %v1885_v0 = vpop.f32.mrf.mxu0 }
0x13db   :  { %v1886_v1 = vadd.f32 %v1885_v0, %v3199_v52 }
0x13dc   :  { %v2713_v29 = vpop.f32.mrf.mxu0 }
0x13dd   :  { %2888 = vtanh.f32 %v1886_v1  ;;  %v2362_v5 = vmul.f32 -1.442695, %v1886_v1 }
0x13de   :  { %2890 = vpow2.f32 %v2364_v4  ;;  %v2755_v42 = vpop.f32.mrf.mxu1 }
0x13df   :  { %2892 = vpow2.f32 %v2362_v5 }
0x13e0   :  { %v2264_v43 = vpop.f32.mrf.mxu1 }
0x13e2   :  { %v2758_v46 = vpop.f32.mrf.mxu1 }
0x13e4   :  { %v2274_v47 = vpop.f32.mrf.mxu1 }
0x13e6   :  { %v2887_v2 = vpop.eup %2886  ;;  %v2761_v54 = vpop.f32.mrf.mxu1 }
0x13e7   :  { %2001 = vrot.lane.b32.xlu0 %v2887_v2, %s2974_s3 }
0x13e8   :  { %v2284_v59 = vpop.f32.mrf.mxu1 }
0x13ea   :  { %v2889_v3 = vpop.eup %2888 }
0x13eb   :  { %1898 = vrot.lane.b32.xlu1 %v2889_v3, %s2974_s3  ;;  %v2891_v6 = vpop.eup %2890 }
0x13ec   :  { %v1995_v7 = vadd.f32 1.0, %v2891_v6  ;;  %v2893_v33 = vpop.eup %2892 }
0x13ed   :  { %v1892_v37 = vadd.f32 1.0, %v2893_v33 }
0x13ee   :  { %2894 = vrcp.f32 %v1995_v7 }
0x13ef   :  { %2896 = vrcp.f32 %v1892_v37 }
0x13fb   :  { %v2895_v8 = vpop.eup %2894 }
0x13fc   :  { %v2897_v48 = vpop.eup %2896  ;;  %v1999_v16 = vmul.f32 %v2895_v8, %v3457_v34 }
0x13fd   :  { %v1896_v23 = vmul.f32 %v2897_v48, %v3461_v38  ;;  %v2038_v38 = vld [vmem:[#allocation5 + $0x28] sm:$0xff] }
0x1459   :  { %v2002_v52 = vpop.permute.xlu0 %2001 }
0x145a   :  { %v2004_v9 = vmul.f32 %v2895_v8, %v2002_v52 }
0x145c   :  { %2006 = vrot.lane.b32.xlu0 %v2004_v9, %s2975_s6 }
0x145d   :  { %v1899_v10 = vpop.permute.xlu1 %1898 }
0x145e   :  { %v1901_v14 = vmul.f32 %v2897_v48, %v1899_v10 }
0x1460   :  { %1903 = vrot.lane.b32.xlu1 %v1901_v14, %s2975_s6 }
0x14ce   :  { %v2007_v17 = vpop.permute.xlu0 %2006 }
0x14cf   :  { %v2009_v13 = vadd.f32 %v2007_v17, %v1999_v16 }
0x14d1   :  { %2898 = vtanh.f32 %v2009_v13 }
0x14d2   :  { %v1904_v20 = vpop.permute.xlu1 %1903 }
0x14d3   :  { %v1906_v15 = vadd.f32 %v1904_v20, %v1896_v23 }
0x14d5   :  { %2900 = vtanh.f32 %v1906_v15 }
0x14de   :  { %v2899_v18 = vpop.eup %2898 }
0x14df   :  { %2012 = vrot.lane.b32.xlu0 %v2899_v18, %s2974_s3 }
0x14e2   :  { %v2901_v22 = vpop.eup %2900 }
0x14e3   :  { %1909 = vrot.lane.b32.xlu1 %v2901_v22, %s2974_s3 }
0x1551   :  { %v2013_v21 = vpop.permute.xlu0 %2012 }
0x1552   :  { %v2015_v25 = vmul.f32 %v2895_v8, %v2013_v21 }
0x1554   :  { %2017 = vrot.lane.b32.xlu0 %v2015_v25, %s2975_s6 }
0x1555   :  { %v1910_v56 = vpop.permute.xlu1 %1909 }
0x1556   :  { %v1912_v26 = vmul.f32 %v2897_v48, %v1910_v56 }
0x1558   :  { %1914 = vrot.lane.b32.xlu1 %v1912_v26, %s2975_s6 }
0x15c6   :  { %v2018_v27 = vpop.permute.xlu0 %2017 }
0x15c7   :  { %2020 = vst.msk [vmem:[#allocation5] sm:$0xff] %vm92_vm0, %v2018_v27 }
0x15ca   :  { %v1915_v28 = vpop.permute.xlu1 %1914 }
0x15cb   :  { %1918 = vst.msk [vmem:[#allocation4 + $0x38] sm:$0xff] %vm92_vm0, %v1915_v28 }
0x15ce   :  { %v2033_v31 = vld [vmem:[#allocation5] sm:$0xff] }
0x15cf   :  { %2733 = vmatprep.mubr.msk.f32.mxu0 %vm92_vm0, %v2033_v31 }
0x15d0   :  { %2734 = vmatmul.mubr.msk.f32.vlgmr.msra.gmra.mxu0 %vm92_vm0, %v2034_v49 }
0x15d1   :  { %2736 = vmatprep.mubr.msk.f32.mxu0 %vm92_vm0, %v2035_v32 }
0x15d2   :  { %v2028_v34 = vld [vmem:[#allocation4 + $0x38] sm:$0xff] }
0x15d3   :  { %2763 = vmatmul.mubr.msk.f32.gmra.mxu1 %vm92_vm0, %v2028_v34 }
0x15d4   :  { %2737 = vmatmul.mubr.msk.f32.gmra.mxu0 %vm92_vm0, %v2036_v36 }
0x15d5   :  { %2739 = vmatprep.mubr.msk.f32.mxu0 %vm92_vm0, %v2037_v35 }
0x15d8   :  { %2740 = vmatmul.mubr.msk.f32.gmra.mxu0 %vm92_vm0, %v2038_v38 }
0x15d9   :  { %2742 = vmatprep.mubr.msk.f32.mxu0 %vm92_vm0, %v2039_v39 }
0x15dc   :  { %2743 = vmatmul.mubr.msk.f32.gmra.mxu0 %vm92_vm0, %v2040_v11 }
0x1690   :  { %v2735_v50 = vpop.f32.mrf.mxu0 }
0x1691   :  { %v2270_v51 = vadd.f32 %v2755_v42, %v2735_v50 }
0x1692   :  { %v2135_v45 = vpop.f32.mrf.mxu0 }
0x1693   :  { %2304 = vst.msk [vmem:[%s3543_s9 + $0x8] sm:$0xff] %vm92_vm0, %v2270_v51  ;;  %v2265_v53 = vadd.f32 %v2264_v43, %v2135_v45  ;;  %v2764_v61 = vpop.f32.mrf.mxu1 }
0x1694   :  { %v2738_v40 = vpop.f32.mrf.mxu0 }
0x1695   :  { %2303 = vst.msk [vmem:[%s3543_s9] sm:$0xff] %vm92_vm0, %v2265_v53  ;;  %v2280_v55 = vadd.f32 %v2758_v46, %v2738_v40  ;;  %v2294_v1 = vpop.f32.mrf.mxu1 }
0x1696   :  { %v2145_v41 = vpop.f32.mrf.mxu0 }
0x1697   :  { %2306 = vst.msk [vmem:[%s3543_s9 + $0x18] sm:$0xff] %vm92_vm0, %v2280_v55  ;;  %v2275_v58 = vadd.f32 %v2274_v47, %v2145_v41 }
0x1698   :  { %v2741_v44 = vpop.f32.mrf.mxu0 }
0x1699   :  { %2305 = vst.msk [vmem:[%s3543_s9 + $0x10] sm:$0xff] %vm92_vm0, %v2275_v58  ;;  %v2290_v60 = vadd.f32 %v2761_v54, %v2741_v44 }
0x169a   :  { %v2155_v62 = vpop.f32.mrf.mxu0 }
0x169b   :  { %2308 = vst.msk [vmem:[%s3543_s9 + $0x28] sm:$0xff] %vm92_vm0, %v2290_v60  ;;  %v2285_v63 = vadd.f32 %v2284_v59, %v2155_v62 }
0x169c   :  { %v2744_v57 = vpop.f32.mrf.mxu0 }
0x169d   :  { %2307 = vst.msk [vmem:[%s3543_s9 + $0x20] sm:$0xff] %vm92_vm0, %v2285_v63  ;;  %v2300_v0 = vadd.f32 %v2764_v61, %v2744_v57 }
0x169e   :  { %v2165_v29 = vpop.f32.mrf.mxu0 }
0x169f   :  { %2310 = vst.msk [vmem:[%s3543_s9 + $0x38] sm:$0xff] %vm92_vm0, %v2300_v0  ;;  %v2295_v2 = vadd.f32 %v2294_v1, %v2165_v29 }
0x16a1   :  { %2309 = vst.msk [vmem:[%s3543_s9 + $0x30] sm:$0xff] %vm92_vm0, %v2295_v2 }
0x16a2   :  { %2315 = vsyncpa [#allocation7], 1 }
0x16a3   :  { %2316 = vsyncpa [#allocation9], 1 }

</bundles_post_ra>
